<compile_context>
chip_gen: v5e
topology: v5e:2x2
jax: 0.10.0
libtpu: 0.0.40
codegen_flags: <defaults>
</compile_context>

<pallas_src>
import jax
import jax.numpy as jnp
import numpy as np
from jax import lax
from jax.experimental import pallas as pl
from jax.experimental.pallas import tpu as pltpu

OUT_PAD = 128   # 1-wide logit padded to a full lane width -> unmasked (TB, 128) stores


def _make_kernel(k_max, seq_len, v_pad):
    """Kernel closed over static kernel span, sequence length and padded vocab."""

    def kernel(ids_ref, table_ref, wconv_ref, bconv_ref, mask_ref, fcw_ref, fcb_ref, out_ref):
        ids = ids_ref[...]                                           # (TB, L) int32
        tb = ids.shape[0]

        # ---- fused embedding gather: one-hot (TB, L, Vp) bf16 @ table (Vp, E) bf16 on MXU.
        # Exact (pure row selection); removes the wrapper-side HBM round trip of (B, L, E).
        v_iota = lax.broadcasted_iota(jnp.int32, (tb, seq_len, v_pad), 2)
        onehot = (ids[:, :, None] == v_iota).astype(jnp.bfloat16)
        emb = lax.dot_general(
            onehot, table_ref[...],
            dimension_numbers=(((2,), (0,)), ((), ())),
            preferred_element_type=jnp.float32)                      # (TB, L, E) f32

        # ---- window stack: x[:, t, j*E:(j+1)*E] = emb[:, (t + j) % L, :]
        # roll on the f32 MXU output (XLU slot), downcast each piece to bf16 before the
        # lane concat so the biggest intermediate is bf16.
        pieces = [emb.astype(jnp.bfloat16)]
        for j in range(1, k_max):
            pieces.append(pltpu.roll(emb, seq_len - j, axis=1).astype(jnp.bfloat16))
        x = jnp.concatenate(pieces, axis=-1)                         # (TB, L, k_max*E) bf16

        # ---- single fused MXU contraction over all taps and all kernel-size groups.
        acc = lax.dot_general(
            x, wconv_ref[...],
            dimension_numbers=(((2,), (0,)), ((), ())),
            preferred_element_type=jnp.float32)                      # (TB, L, KF_pad) f32

        # bias + ReLU + precomputed validity mask (wrapped / out-of-window positions -> 0;
        # ReLU >= 0 and every valid window is non-empty, so 0 is neutral for the max).
        conv = jnp.maximum(acc + bconv_ref[...][None, :, :], 0.0) * mask_ref[...][None, :, :]
        pooled = jnp.max(conv, axis=1)                               # (TB, KF_pad) f32

        # TODO(synk): dropout is identity here (eval-mode semantics); training-mode dropout
        # would use pltpu.prng_seed / pltpu.prng_random_bits.
        logits = lax.dot_general(
            pooled.astype(jnp.bfloat16), fcw_ref[...],
            dimension_numbers=(((1,), (0,)), ((), ())),
            preferred_element_type=jnp.float32) + fcb_ref[...]       # (TB, 128) lane-dense
        out_ref[...] = logits

    return kernel


def _fuse_params(params, kernel_sizes, num_filters, emb_dim, kf_pad, out_pad):
    """Repack PyTorch-layout params into MXU-friendly fused tensors (single 128-lane block)."""
    k_max = max(kernel_sizes)
    f = num_filters
    kfr = len(kernel_sizes) * f                                      # real fused width (K*F)

    w_groups, b_groups = [], []
    for k in kernel_sizes:
        w = jnp.transpose(params[f"conv{k}_w"], (2, 1, 0))           # (k, E, F)
        w = jnp.pad(w, ((0, k_max - k), (0, 0), (0, 0)))             # zero-pad unused taps
        w_groups.append(w)
        b_groups.append(params[f"conv{k}_b"])                        # (1, F)
    w_fused = jnp.concatenate(w_groups, axis=-1)                     # (k_max, E, K*F)
    w_fused = jnp.pad(w_fused, ((0, 0), (0, 0), (0, kf_pad - kfr)))  # (k_max, E, KF_pad)
    w_fused = w_fused.reshape(k_max * emb_dim, kf_pad).astype(jnp.bfloat16)

    b_fused = jnp.pad(jnp.concatenate(b_groups, axis=-1),
                      ((0, 0), (0, kf_pad - kfr)))                   # (1, KF_pad) f32

    # fc input order is [group0 filters, group1 filters, ...] == pooled column order.
    fc_w = params["fc_w"].reshape(kfr, 1)                            # (K*F, 1)
    fc_w = jnp.pad(fc_w, ((0, kf_pad - kfr), (0, out_pad - 1))).astype(jnp.bfloat16)
    fc_b = jnp.pad(params["fc_b"], ((0, 0), (0, out_pad - 1)))       # (1, 128) f32
    return w_fused, b_fused, fc_w, fc_b


def _make_mask(kernel_sizes, num_filters, seq_len, kf_pad):
    """(L, KF_pad) validity mask: 1 where conv position t is valid for that lane's group."""
    f = num_filters
    mask = np.zeros((seq_len, kf_pad), np.float32)
    for g, k in enumerate(kernel_sizes):
        valid = max(seq_len - k + 1, 0)
        mask[:valid, g * f:(g + 1) * f] = 1.0
    return jnp.asarray(mask)


def simple_cnn_forward(input_ids, attention_mask, params, kernel_sizes, batch_tile=None):
    """Pallas-backed forward pass. attention_mask is accepted (API parity with the PyTorch
    module) but unused, exactly like the reference forward()."""
    del attention_mask
    B, L = input_ids.shape
    V, E = params["embedding"].shape
    F = params[f"conv{kernel_sizes[0]}_w"].shape[0]
    K = len(kernel_sizes)
    k_max = max(kernel_sizes)

    kf_pad = max(128, ((K * F + 127) // 128) * 128)      # fused conv width (single lane block)
    v_pad = ((V + 127) // 128) * 128

    table = jnp.pad(params["embedding"], ((0, v_pad - V), (0, 0))).astype(jnp.bfloat16)
    w_fused, b_fused, fc_w, fc_b = _fuse_params(params, kernel_sizes, F, E, kf_pad, OUT_PAD)
    mask = _make_mask(kernel_sizes, F, L, kf_pad)

    # ---- batch tile: >= 256 flattened MXU rows per step, multiple of 8, VMEM-capped.
    per_sample = L * (v_pad * 2 + E * 4 + 2 * k_max * E * 2 + 2 * kf_pad * 4)
    if batch_tile is None:
        tb = max(8, (((256 + L - 1) // L + 7) // 8) * 8)
        tb_cap = max(8, ((16 * 1024 * 1024) // max(per_sample, 1)) // 8 * 8)
        batch_tile = min(tb, tb_cap, 512)
    TB = max(8, ((batch_tile + 7) // 8) * 8)
    TB = min(TB, ((B + 7) // 8) * 8)
    B_pad = ((B + TB - 1) // TB) * TB
    if B_pad != B:
        # pad the batch instead of silently running the whole batch as one tile.
        input_ids = jnp.pad(input_ids, ((0, B_pad - B), (0, 0)))
    grid = (B_pad // TB,)

    # ---- VMEM budget from the actual per-tile footprint, capped v7x-safe (64 MiB physical).
    # (On v5e/v6e a larger budget / larger TB could be used; 48 MiB is safe everywhere.)
    weight_bytes = (table.size + w_fused.size + fc_w.size) * 2 + \
                   (b_fused.size + mask.size + fc_b.size) * 4
    per_tile_bytes = (2 * TB * L * 4 + 2 * TB * OUT_PAD * 4 +
                      TB * per_sample + 2 * weight_bytes)
    vmem_limit = int(min(max(2 * per_tile_bytes, 32 * 1024 * 1024), 48 * 1024 * 1024))

    flops = (2 * B_pad * L * v_pad * E                 # one-hot gather matmul
             + 2 * B_pad * L * (k_max * E) * kf_pad    # fused conv
             + 2 * B_pad * kf_pad * OUT_PAD)           # fc
    bytes_accessed = int(B_pad * L * 4 + B_pad * OUT_PAD * 4 + weight_bytes)

    kernel = _make_kernel(k_max, L, v_pad)
    out_full = pl.pallas_call(
        kernel,
        out_shape=jax.ShapeDtypeStruct((B_pad, OUT_PAD), jnp.float32),
        grid=grid,
        in_specs=[
            pl.BlockSpec((TB, L), lambda i: (i, 0)),              # ids: streamed per batch tile
            pl.BlockSpec((v_pad, E), lambda i: (0, 0)),           # bf16 embedding table (resident)
            pl.BlockSpec((k_max * E, kf_pad), lambda i: (0, 0)),  # fused conv weight (resident)
            pl.BlockSpec((1, kf_pad), lambda i: (0, 0)),          # fused conv bias
            pl.BlockSpec((L, kf_pad), lambda i: (0, 0)),          # precomputed validity mask
            pl.BlockSpec((kf_pad, OUT_PAD), lambda i: (0, 0)),    # fc weight (bf16)
            pl.BlockSpec((1, OUT_PAD), lambda i: (0, 0)),         # fc bias
        ],
        out_specs=pl.BlockSpec((TB, OUT_PAD), lambda i: (i, 0)),
        compiler_params=pltpu.CompilerParams(
            dimension_semantics=("parallel",),
            vmem_limit_bytes=vmem_limit),
        cost_estimate=pl.CostEstimate(
            flops=flops, transcendentals=0, bytes_accessed=bytes_accessed),
    )(input_ids, table, w_fused, b_fused, mask, fc_w, fc_b)

    return out_full[:B, :1]


def reference_forward(input_ids, params, kernel_sizes):
    """Pure-JAX f32 reference mirroring the PyTorch module (eval mode)."""
    emb = jnp.take(params["embedding"], input_ids, axis=0)      # (B, L, E)
    x = jnp.transpose(emb, (0, 2, 1))                           # (B, E, L) == NCL
    pooled = []
    for k in kernel_sizes:
        w = params[f"conv{k}_w"]                                # (F, E, k)
        b = params[f"conv{k}_b"]                                # (1, F)
        conv = lax.conv_general_dilated(
            x, w, window_strides=(1,), padding="VALID",
            dimension_numbers=("NCH", "OIH", "NCH"))            # (B, F, L-k+1)
        conv = jax.nn.relu(conv + b[:, :, None])
        pooled.append(jnp.max(conv, axis=2))                    # (B, F)
    cat = jnp.concatenate(pooled, axis=1)                       # (B, K*F)
    return cat @ params["fc_w"].T + params["fc_b"]              # (B, 1)


def init_params(key, vocab_size, embedding_dim, num_filters, kernel_sizes):
    keys = jax.random.split(key, 3 + 2 * len(kernel_sizes))
    params = {}
    emb = 0.1 * jax.random.normal(keys[0], (vocab_size, embedding_dim), jnp.float32)
    params["embedding"] = emb.at[0].set(0.0)                    # padding_idx=0 -> zero row
    for i, k in enumerate(kernel_sizes):
        params[f"conv{k}_w"] = 0.1 * jax.random.normal(
            keys[1 + 2 * i], (num_filters, embedding_dim, k), jnp.float32)
        params[f"conv{k}_b"] = 0.1 * jax.random.normal(
            keys[2 + 2 * i], (1, num_filters), jnp.float32)
    params["fc_w"] = 0.1 * jax.random.normal(
        keys[-2], (1, len(kernel_sizes) * num_filters), jnp.float32)
    params["fc_b"] = 0.1 * jax.random.normal(keys[-1], (1, 1), jnp.float32)
    return params


if __name__ == "__main__":
    vocab_size = 50
    embedding_dim = 32
    num_filters = 16
    kernel_sizes = (3, 4, 5)
    batch, seq_len = 16, 16     # toy size -> TB=16 (256 MXU rows), grid=(1,)

    root = jax.random.PRNGKey(0)
    k_params, k_ids = jax.random.split(root)

    params = init_params(k_params, vocab_size, embedding_dim, num_filters, kernel_sizes)
    input_ids = jax.random.randint(k_ids, (batch, seq_len), 0, vocab_size, dtype=jnp.int32)
    attention_mask = jnp.ones((batch, seq_len), jnp.int32)      # unused by forward()

    out = simple_cnn_forward(input_ids, attention_mask, params, kernel_sizes)
    out = jax.block_until_ready(out)

    ref = reference_forward(input_ids, params, kernel_sizes)
    # bf16 MXU operands -> compare against the f32 reference with a loosened tolerance.
    np.testing.assert_allclose(np.asarray(out), np.asarray(ref), rtol=2e-2, atol=2e-2)

    print("KERNEL_OK")
</pallas_src>

<mosaic_0001>
module attributes {stable_mosaic.version = 11 : i64} {
  func.func @kernel(%arg0: i32, %arg1: memref<16x16xi32, #tpu.memory_space<vmem>>, %arg2: memref<128x32xbf16, #tpu.memory_space<vmem>>, %arg3: memref<160x128xbf16, #tpu.memory_space<vmem>>, %arg4: memref<1x128xf32, #tpu.memory_space<vmem>>, %arg5: memref<16x128xf32, #tpu.memory_space<vmem>>, %arg6: memref<128x128xbf16, #tpu.memory_space<vmem>>, %arg7: memref<1x128xf32, #tpu.memory_space<vmem>>, %arg8: memref<16x128xf32, #tpu.memory_space<vmem>>) attributes {dimension_semantics = [#tpu.dimension_semantics<parallel>], iteration_bounds = array<i64: 1>, scalar_prefetch = 0 : i64, scratch_operands = 0 : i64, tpu.core_type = #tpu.core_type<tc>, window_params = [{transform_indices = @transform_0, window_bounds = array<i64: 16, 16>}, {pipeline_mode = #tpu.pipeline_mode<synchronous>, transform_indices = @transform_1, window_bounds = array<i64: 128, 32>}, {pipeline_mode = #tpu.pipeline_mode<synchronous>, transform_indices = @transform_2, window_bounds = array<i64: 160, 128>}, {pipeline_mode = #tpu.pipeline_mode<synchronous>, transform_indices = @transform_3, window_bounds = array<i64: 1, 128>}, {pipeline_mode = #tpu.pipeline_mode<synchronous>, transform_indices = @transform_4, window_bounds = array<i64: 16, 128>}, {pipeline_mode = #tpu.pipeline_mode<synchronous>, transform_indices = @transform_5, window_bounds = array<i64: 128, 128>}, {pipeline_mode = #tpu.pipeline_mode<synchronous>, transform_indices = @transform_6, window_bounds = array<i64: 1, 128>}, {transform_indices = @transform_7, window_bounds = array<i64: 16, 128>}]} {
    %c0 = arith.constant 0 : index
    %c0_0 = arith.constant 0 : index
    %0 = vector.load %arg1[%c0, %c0_0] : memref<16x16xi32, #tpu.memory_space<vmem>>, vector<16x16xi32>
    %1 = tpu.iota {dimensions = array<i32: 2>} : vector<16x16x128xi32>
    %2 = vector.shape_cast %0 : vector<16x16xi32> to vector<16x16x1xi32>
    %3 = vector.broadcast %2 : vector<16x16x1xi32> to vector<16x16x128xi32>
    %4 = arith.cmpi eq, %3, %1 : vector<16x16x128xi32>
    %5 = arith.extui %4 : vector<16x16x128xi1> to vector<16x16x128xi32>
    %6 = arith.sitofp %5 : vector<16x16x128xi32> to vector<16x16x128xf32>
    %7 = arith.truncf %6 : vector<16x16x128xf32> to vector<16x16x128xbf16>
    %c0_1 = arith.constant 0 : index
    %c0_2 = arith.constant 0 : index
    %8 = vector.load %arg2[%c0_1, %c0_2] : memref<128x32xbf16, #tpu.memory_space<vmem>>, vector<128x32xbf16>
    %cst = arith.constant dense<0.000000e+00> : vector<16x16x32xf32>
    %9 = tpu.matmul %7, %8, %cst {dimension_numbers = #tpu.dot_dimension_numbers<[2], [0], [0, 1], [1], [0, 0, 0, 1, 1, 1], [], []>} : vector<16x16x128xbf16>, vector<128x32xbf16>, vector<16x16x32xf32> -> vector<16x16x32xf32>
    %10 = arith.truncf %9 : vector<16x16x32xf32> to vector<16x16x32xbf16>
    %c15_i32 = arith.constant 15 : i32
    %11 = tpu.dynamic_rotate %9 by %c15_i32 dim 1 : vector<16x16x32xf32>, i32 -> vector<16x16x32xf32>
    %12 = arith.truncf %11 : vector<16x16x32xf32> to vector<16x16x32xbf16>
    %c14_i32 = arith.constant 14 : i32
    %13 = tpu.dynamic_rotate %9 by %c14_i32 dim 1 : vector<16x16x32xf32>, i32 -> vector<16x16x32xf32>
    %14 = arith.truncf %13 : vector<16x16x32xf32> to vector<16x16x32xbf16>
    %c13_i32 = arith.constant 13 : i32
    %15 = tpu.dynamic_rotate %9 by %c13_i32 dim 1 : vector<16x16x32xf32>, i32 -> vector<16x16x32xf32>
    %16 = arith.truncf %15 : vector<16x16x32xf32> to vector<16x16x32xbf16>
    %c12_i32 = arith.constant 12 : i32
    %17 = tpu.dynamic_rotate %9 by %c12_i32 dim 1 : vector<16x16x32xf32>, i32 -> vector<16x16x32xf32>
    %18 = arith.truncf %17 : vector<16x16x32xf32> to vector<16x16x32xbf16>
    %19 = tpu.concatenate %10, %12, %14, %16, %18 in 2 : vector<16x16x32xbf16>, vector<16x16x32xbf16>, vector<16x16x32xbf16>, vector<16x16x32xbf16>, vector<16x16x32xbf16> -> vector<16x16x160xbf16>
    %c0_3 = arith.constant 0 : index
    %c0_4 = arith.constant 0 : index
    %20 = vector.load %arg3[%c0_3, %c0_4] : memref<160x128xbf16, #tpu.memory_space<vmem>>, vector<160x128xbf16>
    %cst_5 = arith.constant dense<0.000000e+00> : vector<16x16x128xf32>
    %21 = tpu.matmul %19, %20, %cst_5 {dimension_numbers = #tpu.dot_dimension_numbers<[2], [0], [0, 1], [1], [0, 0, 0, 1, 1, 1], [], []>} : vector<16x16x160xbf16>, vector<160x128xbf16>, vector<16x16x128xf32> -> vector<16x16x128xf32>
    %c0_6 = arith.constant 0 : index
    %c0_7 = arith.constant 0 : index
    %22 = vector.load %arg4[%c0_6, %c0_7] : memref<1x128xf32, #tpu.memory_space<vmem>>, vector<1x128xf32>
    %23 = vector.shape_cast %22 : vector<1x128xf32> to vector<1x1x128xf32>
    %24 = vector.broadcast %23 : vector<1x1x128xf32> to vector<16x16x128xf32>
    %25 = arith.addf %21, %24 : vector<16x16x128xf32>
    %cst_8 = arith.constant 0.000000e+00 : f32
    %26 = vector.broadcast %cst_8 : f32 to vector<16x16x128xf32>
    %27 = arith.maximumf %25, %26 : vector<16x16x128xf32>
    %c0_9 = arith.constant 0 : index
    %c0_10 = arith.constant 0 : index
    %28 = vector.load %arg5[%c0_9, %c0_10] : memref<16x128xf32, #tpu.memory_space<vmem>>, vector<16x128xf32>
    %29 = vector.shape_cast %28 : vector<16x128xf32> to vector<1x16x128xf32>
    %30 = vector.broadcast %29 : vector<1x16x128xf32> to vector<16x16x128xf32>
    %31 = arith.mulf %27, %30 : vector<16x16x128xf32>
    %cst_11 = arith.constant dense<0xFF800000> : vector<16x128xf32>
    %32 = vector.multi_reduction <maximumf>, %31, %cst_11 [1] : vector<16x16x128xf32> to vector<16x128xf32>
    %33 = arith.truncf %32 : vector<16x128xf32> to vector<16x128xbf16>
    %c0_12 = arith.constant 0 : index
    %c0_13 = arith.constant 0 : index
    %34 = vector.load %arg6[%c0_12, %c0_13] : memref<128x128xbf16, #tpu.memory_space<vmem>>, vector<128x128xbf16>
    %cst_14 = arith.constant dense<0.000000e+00> : vector<16x128xf32>
    %35 = tpu.matmul %33, %34, %cst_14 {dimension_numbers = #tpu.dot_dimension_numbers<[1], [0], [0], [1], [0, 0, 1, 1], [], []>} : vector<16x128xbf16>, vector<128x128xbf16>, vector<16x128xf32> -> vector<16x128xf32>
    %c0_15 = arith.constant 0 : index
    %c0_16 = arith.constant 0 : index
    %36 = vector.load %arg7[%c0_15, %c0_16] : memref<1x128xf32, #tpu.memory_space<vmem>>, vector<1x128xf32>
    %37 = vector.broadcast %36 : vector<1x128xf32> to vector<16x128xf32>
    %38 = arith.addf %35, %37 : vector<16x128xf32>
    %c0_17 = arith.constant 0 : index
    %c0_18 = arith.constant 0 : index
    %39 = vector.load %arg8[%c0_17, %c0_18] : memref<16x128xf32, #tpu.memory_space<vmem>>, vector<16x128xf32>
    tpu.vector_store %arg8[%c0_17, %c0_18], %38 {strides = array<i32>} : memref<16x128xf32, #tpu.memory_space<vmem>>, vector<16x128xf32>,
    return
  }
  func.func @transform_0(%arg0: i32) -> (i32, i32) {
    %c0_i32 = arith.constant 0 : i32
    %c0_i32_0 = arith.constant 0 : i32
    return %arg0, %c0_i32 : i32, i32
  }
  func.func @transform_1(%arg0: i32) -> (i32, i32) {
    %c0_i32 = arith.constant 0 : i32
    %c0_i32_0 = arith.constant 0 : i32
    %c0_i32_1 = arith.constant 0 : i32
    return %c0_i32, %c0_i32_0 : i32, i32
  }
  func.func @transform_2(%arg0: i32) -> (i32, i32) {
    %c0_i32 = arith.constant 0 : i32
    %c0_i32_0 = arith.constant 0 : i32
    %c0_i32_1 = arith.constant 0 : i32
    return %c0_i32, %c0_i32_0 : i32, i32
  }
  func.func @transform_3(%arg0: i32) -> (i32, i32) {
    %c0_i32 = arith.constant 0 : i32
    %c0_i32_0 = arith.constant 0 : i32
    %c0_i32_1 = arith.constant 0 : i32
    return %c0_i32, %c0_i32_0 : i32, i32
  }
  func.func @transform_4(%arg0: i32) -> (i32, i32) {
    %c0_i32 = arith.constant 0 : i32
    %c0_i32_0 = arith.constant 0 : i32
    %c0_i32_1 = arith.constant 0 : i32
    return %c0_i32, %c0_i32_0 : i32, i32
  }
  func.func @transform_5(%arg0: i32) -> (i32, i32) {
    %c0_i32 = arith.constant 0 : i32
    %c0_i32_0 = arith.constant 0 : i32
    %c0_i32_1 = arith.constant 0 : i32
    return %c0_i32, %c0_i32_0 : i32, i32
  }
  func.func @transform_6(%arg0: i32) -> (i32, i32) {
    %c0_i32 = arith.constant 0 : i32
    %c0_i32_0 = arith.constant 0 : i32
    %c0_i32_1 = arith.constant 0 : i32
    return %c0_i32, %c0_i32_0 : i32, i32
  }
  func.func @transform_7(%arg0: i32) -> (i32, i32) {
    %c0_i32 = arith.constant 0 : i32
    %c0_i32_0 = arith.constant 0 : i32
    return %arg0, %c0_i32 : i32, i32
  }
}

</mosaic_0001>

<bundles_post_ra>
// kernel: tpu_custom_call.1
= control target key start
LH: loop header
LB: loop body
LE: loop exit
PB: predicated region body
PF: predicated region fallthrough
CT: control target
= control target key end

     0   :  { %12 = vsyncpa [#allocation3], 0  ;;  %s4132_s0 = inlined_call_operand.hbm [shape: s32[16,16], index: 0, kind: input, shape index: {}]   ;;  %s4133_s1 = inlined_call_operand.vmem [shape: bf16[128,32], index: 1, kind: input, shape index: {}]   ;;  %s4134_s2 = inlined_call_operand.vmem [shape: bf16[160,128], index: 2, kind: input, shape index: {}]   ;;  %s4135_s3 = inlined_call_operand.vmem [shape: f32[1,128], index: 3, kind: input, shape index: {}]   ;;  %s4136_s4 = inlined_call_operand.hbm [shape: f32[16,128], index: 4, kind: input, shape index: {}]   ;;  %s4137_s5 = inlined_call_operand.hbm [shape: bf16[128,128], index: 5, kind: input, shape index: {}]   ;;  %s4138_s6 = inlined_call_operand.vmem [shape: f32[1,128], index: 6, kind: input, shape index: {}]   ;;  %s4139_s7 = inlined_call_operand.hbm [shape: f32[16,128], index: 7, kind: output, shape index: {}]  }
   0x1   :  { %13 = vsyncpa [#allocation6], 0 }
   0x2   :  { %14 = vsyncpa [#allocation4], 0  ;;  %s38_s26 = sshll.u32 %s4136_s4, 4  ;;  %s2710_s27 = smov [#allocation5]   ;;  %s39_s26 = int_to_ptr.hbm [resolvable:$true] %s38_s26 }
   0x3   :  { %s40_s28 = sshll.u32 %s2710_s27, 4  ;;  %s19_s8 = sshll.u32 %s4132_s0, 4  ;;  %s41_s28 = int_to_ptr.vmem [resolvable:$true] %s40_s28  ;;  %s20_s8 = int_to_ptr.hbm [resolvable:$true] %s19_s8 }
   0x4   :  { %s2711_s9 = smov 128   ;;  %s2712_s10 = smov 8  }
   0x5   :  { %46 = dma.hbm_to_vmem [thread:$0]  %s39_s26, 256, %s41_s28, [#allocation6], %s2711_s9, %s2711_s9, %s2712_s10  }
   0x6   :  { %s2713_s11 = smov [#allocation2]   ;;  %s51_s4 = sshll.u32 %s4137_s5, 4  ;;  %s52_s4 = int_to_ptr.hbm [resolvable:$true] %s51_s4 }
   0x7   :  { %s21_s12 = sshll.u32 %s2713_s11, 4  ;;  %s2714_s0 = smov [#allocation7]   ;;  %s22_s12 = int_to_ptr.vmem [resolvable:$true] %s21_s12 }
   0x8   :  { %27 = dma.hbm_to_vmem [thread:$0]  %s20_s8, 256, %s22_s12, [#allocation3], %s2711_s9, %s2711_s9, %s2712_s10  }
   0x9   :  { %s53_s15 = sshll.u32 %s2714_s0, 4  ;;  %s2715_s16 = smov 64   ;;  %s54_s15 = int_to_ptr.vmem [resolvable:$true] %s53_s15 }
   0xa   :  { %s2716_s17 = smov 4  }
   0xb   :  { %59 = dma.hbm_to_vmem [thread:$0]  %s52_s4, 1024, %s54_s15, [#allocation6], %s2715_s16, %s2715_s16, %s2716_s17  }
   0xc   :  { %2704 = dma.done.wait [#allocation3], 256  }
   0xd   :  { %2705 = vsyncadd [#allocation3], 4294967040 }
   0xe   :  { %2706 = dma.done.wait [#allocation6], 1280  }
   0xf   :  { %2707 = vsyncadd [#allocation6], 4294966016  ;;  %v77_v0 = vlaneseq  ;;  %v2784_v2 = vld [vmem:[#allocation2] sm:$0xff]  ;;  %v2803_v10 = vld [vmem:[#allocation2 + $0x8] sm:$0xff]  ;;  %v2717_v32 = vmov 0.0   ;;  %s2718_s4 = smov 96  }
  0x10   :  { %v92_v3 = vperm.slane %v2784_v2, 1  ;;  %v79_v4 = vperm.slane %v2784_v2, 0  ;;  %v105_v5 = vperm.slane %v2784_v2, 2  ;;  %v118_v7 = vperm.slane %v2784_v2, 3  ;;  %v2535_v12 = vld [vmem:[%s4133_s1 + $0x38] sm:$0xff]  ;;  %v2534_v13 = vld [vmem:[%s4133_s1 + $0x30] sm:$0xff] }
  0x11   :  { %v2779_v1 = vshrl.u32 %v77_v0, 7  ;;  %v131_v8 = vperm.slane %v2784_v2, 4  ;;  %v144_v9 = vperm.slane %v2784_v2, 5  ;;  %v235_v11 = vperm.slane %v2803_v10, 4  ;;  %575 = vmatpush.bf16.msra.mxu0 %v2535_v12  ;;  %2554 = vmatpush.bf16.msra.mxu3 %v2535_v12  ;;  %v2533_v17 = vld [vmem:[%s4133_s1 + $0x28] sm:$0xff]  ;;  %v2532_v18 = vld [vmem:[%s4133_s1 + $0x20] sm:$0xff] }
  0x12   :  { %v170_v14 = vperm.slane %v2784_v2, 7  ;;  %v157_v15 = vperm.slane %v2784_v2, 6  ;;  %v248_v16 = vperm.slane %v2803_v10, 5  ;;  %v261_v19 = vperm.slane %v2803_v10, 6  ;;  %v2531_v21 = vld [vmem:[%s4133_s1 + $0x18] sm:$0xff]  ;;  %v2530_v22 = vld [vmem:[%s4133_s1 + $0x10] sm:$0xff] }
  0x13   :  { %2585 = vset.pattern.permute.xlu1 %v2779_v1  ;;  %2583 = vset.pattern.permute.xlu0 %v2779_v1  ;;  %v2790_v6 = vadd.s32 8, %v2779_v1  ;;  %v183_v20 = vperm.slane %v2803_v10, 0  ;;  %v2529_v23 = vld [vmem:[%s4133_s1 + $0x8] sm:$0xff]  ;;  %v2528_v24 = vld [vmem:[%s4133_s1] sm:$0xff]  ;;  %v274_v25 = vperm.slane %v2803_v10, 7  ;;  %v196_v27 = vperm.slane %v2803_v10, 1 }
  0x14   :  { %2587 = vset.pattern.permute.xlu2 %v2779_v1  ;;  %v2847_v28 = vand.u32 127, %v77_v0  ;;  %v209_v43 = vperm.slane %v2803_v10, 2  ;;  %v222_v44 = vperm.slane %v2803_v10, 3  ;;  %s2719_s0 = smov 32   ;;  %s2720_s11 = smov [#allocation8]  }
  0x15   :  { %576 = vmatpush.bf16.msra.mxu0 %v2534_v13  ;;  %2555 = vmatpush.bf16.msra.mxu3 %v2534_v13  ;;  %s2360_s1 = sshll.u32 %s2720_s11, 4  ;;  %s2362_s14 = sshll.u32 %s4139_s7, 4  ;;  %s2361_s1 = int_to_ptr.vmem [resolvable:$true] %s2360_s1  ;;  %s2363_s14 = int_to_ptr.hbm [resolvable:$true] %s2362_s14 }
  0x19   :  { %577 = vmatpush.bf16.msra.mxu0 %v2533_v17  ;;  %2556 = vmatpush.bf16.msra.mxu3 %v2533_v17 }
  0x1b   :  { %97 = vperm.xlu1 %2585, %v92_v3   ;;  %84 = vperm.xlu0 %2583, %v79_v4  }
  0x1c   :  { %110 = vperm.xlu2 %2587, %v105_v5  }
  0x1d   :  { %578 = vmatpush.bf16.msra.mxu0 %v2532_v18  ;;  %2557 = vmatpush.bf16.msra.mxu3 %v2532_v18 }
  0x21   :  { %579 = vmatpush.bf16.msra.mxu0 %v2531_v21  ;;  %2558 = vmatpush.bf16.msra.mxu3 %v2531_v21 }
  0x23   :  { %2586 = vset.pattern.permute.xlu1 %v2790_v6  ;;  %2584 = vset.pattern.permute.xlu0 %v2790_v6 }
  0x24   :  { %2588 = vset.pattern.permute.xlu2 %v2790_v6 }
  0x25   :  { %580 = vmatpush.bf16.msra.mxu0 %v2530_v22  ;;  %2559 = vmatpush.bf16.msra.mxu3 %v2530_v22 }
  0x29   :  { %581 = vmatpush.bf16.msra.mxu0 %v2529_v23  ;;  %2560 = vmatpush.bf16.msra.mxu3 %v2529_v23 }
  0x2b   :  { %103 = vperm.xlu1 %2586, %v92_v3   ;;  %90 = vperm.xlu0 %2584, %v79_v4  }
  0x2c   :  { %116 = vperm.xlu2 %2588, %v105_v5  }
  0x2d   :  { %582 = vmatpush.bf16.msra.mxu0 %v2528_v24  ;;  %2561 = vmatpush.bf16.msra.mxu3 %v2528_v24 }
  0x33   :  { %2589 = vset.pattern.permute.xlu1 %v2779_v1  ;;  %2590 = vset.pattern.permute.xlu0 %v2779_v1 }
  0x34   :  { %129 = vperm.xlu2 %2588, %v118_v7  }
  0x3b   :  { %123 = vperm.xlu1 %2589, %v118_v7   ;;  %136 = vperm.xlu0 %2590, %v131_v8  }
  0x3c   :  { %2592 = vset.pattern.permute.xlu2 %v2779_v1 }
  0x43   :  { %2591 = vset.pattern.permute.xlu1 %v2790_v6  ;;  %2593 = vset.pattern.permute.xlu0 %v2790_v6 }
  0x44   :  { %149 = vperm.xlu2 %2592, %v144_v9  }
  0x4b   :  { %142 = vperm.xlu1 %2591, %v131_v8   ;;  %246 = vperm.xlu0 %2593, %v235_v11  }
  0x4c   :  { %240 = vperm.xlu2 %2592, %v235_v11  }
  0x53   :  { %155 = vperm.xlu1 %2591, %v144_v9   ;;  %2596 = vset.pattern.permute.xlu0 %v2779_v1 }
  0x54   :  { %2595 = vset.pattern.permute.xlu2 %v2790_v6 }
  0x5b   :  { %2594 = vset.pattern.permute.xlu1 %v2779_v1  ;;  %175 = vperm.xlu0 %2596, %v170_v14  }
  0x5c   :  { %168 = vperm.xlu2 %2595, %v157_v15  }
  0x63   :  { %162 = vperm.xlu1 %2594, %v157_v15   ;;  %2599 = vset.pattern.permute.xlu0 %v2790_v6 }
  0x64   :  { %259 = vperm.xlu2 %2595, %v248_v16  }
  0x6b   :  { %253 = vperm.xlu1 %2594, %v248_v16   ;;  %194 = vperm.xlu0 %2599, %v183_v20  }
  0x6c   :  { %2598 = vset.pattern.permute.xlu2 %v2779_v1 }
  0x73   :  { %2597 = vset.pattern.permute.xlu1 %v2790_v6  ;;  %2602 = vset.pattern.permute.xlu0 %v2779_v1 }
  0x74   :  { %266 = vperm.xlu2 %2598, %v261_v19  }
  0x76   :  { %v111_v26 = vpop.permute.xlu2 %110 }
  0x77   :  { %vm291_vm4 = vcmp.eq.s32.totalorder %v111_v26, %v2847_v28 }
  0x78   :  { %v2380_v55 = vsel %vm291_vm4, 1.0, %v2717_v32 }
  0x79   :  { %v387_v59 = vpack.c.bf16 %v2380_v55, %v2380_v55 }
  0x7b   :  { %181 = vperm.xlu1 %2597, %v170_v14   ;;  %214 = vperm.xlu0 %2602, %v209_v43   ;;  %v467_v0 = vunpack.c.l.b16 %v387_v59 }
  0x7c   :  { %188 = vperm.xlu2 %2598, %v183_v20  }
  0x83   :  { %272 = vperm.xlu1 %2597, %v261_v19   ;;  %2605 = vset.pattern.permute.xlu0 %v2790_v6 }
  0x84   :  { %2601 = vset.pattern.permute.xlu2 %v2790_v6 }
  0x86   :  { %v117_v31 = vpop.permute.xlu2 %116 }
  0x87   :  { %vm292_vm5 = vcmp.eq.s32.totalorder %v117_v31, %v2847_v28 }
  0x88   :  { %v2381_v56 = vsel %vm292_vm5, 1.0, %v2717_v32 }
  0x89   :  { %v388_v60 = vpack.c.bf16 %v2381_v56, %v2381_v56 }
  0x8b   :  { %2600 = vset.pattern.permute.xlu1 %v2779_v1  ;;  %v468_v2 = vunpack.c.l.b16 %v388_v60 }
  0x8c   :  { %285 = vperm.xlu2 %2601, %v274_v25  }
  0x8d   :  { %v85_v29 = vpop.permute.xlu0 %84  ;;  %v98_v30 = vpop.permute.xlu1 %97  ;;  %v497_v7 = vpack.c.b16 %v468_v2, %v467_v0 }
  0x8e   :  { %vm287_vm0 = vcmp.eq.s32.totalorder %v85_v29, %v2847_v28  ;;  %v130_v38 = vpop.permute.xlu2 %129  ;;  %vm289_vm2 = vcmp.eq.s32.totalorder %v98_v30, %v2847_v28 }
  0x8f   :  { %v2376_v33 = vsel %vm287_vm0, 1.0, %v2717_v32  ;;  %v2378_v45 = vsel %vm289_vm2, 1.0, %v2717_v32  ;;  %vm294_vm8 = vcmp.eq.s32.totalorder %v130_v38, %v2847_v28 }
  0x90   :  { %v383_v35 = vpack.c.bf16 %v2376_v33, %v2376_v33  ;;  %v385_v48 = vpack.c.bf16 %v2378_v45, %v2378_v45  ;;  %v2383_v9 = vsel %vm294_vm8, 1.0, %v2717_v32 }
  0x91   :  { %v390_v13 = vpack.c.bf16 %v2383_v9, %v2383_v9 }
  0x92   :  { %v463_v39 = vunpack.c.l.b16 %v383_v35  ;;  %v465_v50 = vunpack.c.l.b16 %v385_v48 }
  0x93   :  { %279 = vperm.xlu1 %2600, %v274_v25   ;;  %v470_v15 = vunpack.c.l.b16 %v390_v13  ;;  %v2908_v13 = vld [vmem:[%s4134_s2 + $0x48] sm:$0xff] }
  0x94   :  { %207 = vperm.xlu2 %2601, %v196_v27   ;;  %1940 = vmatpush.bf16.msra.mxu2 %v2908_v13 }
  0x9b   :  { %201 = vperm.xlu1 %2600, %v196_v27  }
  0x9c   :  { %2604 = vset.pattern.permute.xlu2 %v2779_v1 }
  0x9d   :  { %v91_v34 = vpop.permute.xlu0 %90  ;;  %v104_v41 = vpop.permute.xlu1 %103 }
  0x9e   :  { %vm288_vm1 = vcmp.eq.s32.totalorder %v91_v34, %v2847_v28  ;;  %vm290_vm3 = vcmp.eq.s32.totalorder %v104_v41, %v2847_v28  ;;  %v2861_v47 = vpop.permute.xlu2 %149 }
  0x9f   :  { %v2377_v36 = vsel %vm288_vm1, 1.0, %v2717_v32  ;;  %v2379_v46 = vsel %vm290_vm3, 1.0, %v2717_v32  ;;  %vm297_vm14 = vcmp.eq.s32.totalorder %v2861_v47, %v2847_v28 }
  0xa0   :  { %v384_v37 = vpack.c.bf16 %v2377_v36, %v2377_v36  ;;  %v386_v49 = vpack.c.bf16 %v2379_v46, %v2379_v46 }
  0xa2   :  { %v464_v40 = vunpack.c.l.b16 %v384_v37  ;;  %v466_v51 = vunpack.c.l.b16 %v386_v49  ;;  %v2386_v37 = vsel %vm297_vm14, 1.0, %v2717_v32  ;;  %vm1021_vm14 = vcmp.lt.s32.totalorder %v2779_v1, 4 }
  0xa3   :  { %2603 = vset.pattern.permute.xlu1 %v2790_v6 }
  0xa4   :  { %v495_v42 = vpack.c.b16 %v464_v40, %v463_v39  ;;  %227 = vperm.xlu2 %2604, %v222_v44   ;;  %v496_v54 = vpack.c.b16 %v466_v51, %v465_v50  ;;  %v393_v40 = vpack.c.bf16 %v2386_v37, %v2386_v37 }
  0xa6   :  { %583 = vmatmul.bf16.vlgmr.msra.gmra.mxu0 %v495_v42  ;;  %v241_v53 = vpop.permute.xlu2 %240 }
  0xa7   :  { %vm311_vm6 = vcmp.eq.s32.totalorder %v241_v53, %v2847_v28 }
  0xa8   :  { %v2400_v58 = vsel %vm311_vm6, 1.0, %v2717_v32 }
  0xa9   :  { %v407_v61 = vpack.c.bf16 %v2400_v58, %v2400_v58 }
  0xab   :  { %220 = vperm.xlu1 %2603, %v209_v43   ;;  %v487_v3 = vunpack.c.l.b16 %v407_v61  ;;  %v473_v43 = vunpack.c.l.b16 %v393_v40 }
  0xad   :  { %v137_v52 = vpop.permute.xlu0 %136  ;;  %v124_v57 = vpop.permute.xlu1 %123 }
  0xae   :  { %vm293_vm9 = vcmp.eq.s32.totalorder %v124_v57, %v2847_v28  ;;  %vm295_vm10 = vcmp.eq.s32.totalorder %v137_v52, %v2847_v28 }
  0xaf   :  { %v2382_v10 = vsel %vm293_vm9, 1.0, %v2717_v32  ;;  %v2384_v20 = vsel %vm295_vm10, 1.0, %v2717_v32 }
  0xb0   :  { %v389_v14 = vpack.c.bf16 %v2382_v10, %v2382_v10  ;;  %v391_v23 = vpack.c.bf16 %v2384_v20, %v2384_v20 }
  0xb2   :  { %v469_v16 = vunpack.c.l.b16 %v389_v14  ;;  %v471_v27 = vunpack.c.l.b16 %v391_v23 }
  0xb3   :  { %233 = vperm.xlu1 %2603, %v222_v44  }
  0xb4   :  { %v498_v18 = vpack.c.b16 %v470_v15, %v469_v16  ;;  %v2914_v16 = vld [vmem:[%s4134_s2 + $0x40] sm:$0xff] }
  0xb5   :  { %1941 = vmatpush.bf16.msra.mxu2 %v2914_v16 }
  0xb6   :  { %588 = vmatmul.bf16.gmra.mxu0 %v496_v54  ;;  %v169_v11 = vpop.permute.xlu2 %168 }
  0xb7   :  { %vm300_vm1 = vcmp.eq.s32.totalorder %v169_v11, %v2847_v28 }
  0xb8   :  { %v2389_v53 = vsel %vm300_vm1, 1.0, %v2717_v32  ;;  %vm730_vm1 = vcmp.lt.s32.totalorder %v2779_v1, 7 }
  0xb9   :  { %v396_v57 = vpack.c.bf16 %v2389_v53, %v2389_v53 }
  0xbb   :  { %v476_v60 = vunpack.c.l.b16 %v396_v57 }
  0xbd   :  { %v247_v62 = vpop.permute.xlu0 %246  ;;  %v143_v5 = vpop.permute.xlu1 %142 }
  0xbe   :  { %vm312_vm7 = vcmp.eq.s32.totalorder %v247_v62, %v2847_v28  ;;  %v260_v17 = vpop.permute.xlu2 %259  ;;  %vm296_vm11 = vcmp.eq.s32.totalorder %v143_v5, %v2847_v28 }
  0xbf   :  { %v2401_v63 = vsel %vm312_vm7, 1.0, %v2717_v32  ;;  %vm314_vm12 = vcmp.eq.s32.totalorder %v260_v17, %v2847_v28  ;;  %v2385_v21 = vsel %vm296_vm11, 1.0, %v2717_v32 }
  0xc0   :  { %v408_v4 = vpack.c.bf16 %v2401_v63, %v2401_v63  ;;  %v2403_v22 = vsel %vm314_vm12, 1.0, %v2717_v32  ;;  %v392_v24 = vpack.c.bf16 %v2385_v21, %v2385_v21 }
  0xc1   :  { %v410_v25 = vpack.c.bf16 %v2403_v22, %v2403_v22 }
  0xc2   :  { %v488_v6 = vunpack.c.l.b16 %v408_v4  ;;  %v472_v29 = vunpack.c.l.b16 %v392_v24 }
  0xc3   :  { %v490_v31 = vunpack.c.l.b16 %v410_v25 }
  0xc4   :  { %v507_v8 = vpack.c.b16 %v488_v6, %v487_v3  ;;  %v499_v34 = vpack.c.b16 %v472_v29, %v471_v27 }
  0xc5   :  { %v156_v12 = vpop.permute.xlu1 %155 }
  0xc6   :  { %593 = vmatmul.bf16.gmra.mxu0 %v497_v7  ;;  %643 = vmatmul.bf16.vlgmr.msra.gmra.mxu3 %v507_v8  ;;  %vm298_vm15 = vcmp.eq.s32.totalorder %v156_v12, %v2847_v28 }
  0xc7   :  { %v2387_v38 = vsel %vm298_vm15, 1.0, %v2717_v32  ;;  %vm924_vm15 = vcmp.lt.s32.totalorder %v2779_v1, 5 }
  0xc8   :  { %v394_v41 = vpack.c.bf16 %v2387_v38, %v2387_v38 }
  0xca   :  { %v474_v44 = vunpack.c.l.b16 %v394_v41 }
  0xcc   :  { %v500_v47 = vpack.c.b16 %v474_v44, %v473_v43 }
  0xcd   :  { %v176_v63 = vpop.permute.xlu0 %175 }
  0xce   :  { %v267_v39 = vpop.permute.xlu2 %266  ;;  %vm301_vm6 = vcmp.eq.s32.totalorder %v176_v63, %v2847_v28 }
  0xcf   :  { %vm315_vm0 = vcmp.eq.s32.totalorder %v267_v39, %v2847_v28  ;;  %v2390_v5 = vsel %vm301_vm6, 1.0, %v2717_v32  ;;  %vm1664_vm6 = vcmask 785408  }
  0xd0   :  { %v2404_v45 = vsel %vm315_vm0, 1.0, %v2717_v32  ;;  %v397_v10 = vpack.c.bf16 %v2390_v5, %v2390_v5  ;;  %vm827_vm0 = vcmp.lt.s32.totalorder %v2779_v1, 6 }
  0xd1   :  { %v411_v48 = vpack.c.bf16 %v2404_v45, %v2404_v45 }
  0xd2   :  { %v477_v15 = vunpack.c.l.b16 %v397_v10 }
  0xd3   :  { %v491_v51 = vunpack.c.l.b16 %v411_v48 }
  0xd5   :  { %v163_v19 = vpop.permute.xlu1 %162 }
  0xd6   :  { %598 = vmatmul.bf16.gmra.mxu0 %v498_v18  ;;  %v189_v46 = vpop.permute.xlu2 %188  ;;  %vm299_vm2 = vcmp.eq.s32.totalorder %v163_v19, %v2847_v28 }
  0xd7   :  { %v2388_v54 = vsel %vm299_vm2, 1.0, %v2717_v32  ;;  %vm303_vm8 = vcmp.eq.s32.totalorder %v189_v46, %v2847_v28  ;;  %vm1582_vm2 = vcmask 261120  }
  0xd8   :  { %v395_v58 = vpack.c.bf16 %v2388_v54, %v2388_v54  ;;  %v2392_v19 = vsel %vm303_vm8, 1.0, %v2717_v32  ;;  %vm2271_vm8 = vcmask 1042434  }
  0xd9   :  { %v399_v22 = vpack.c.bf16 %v2392_v19, %v2392_v19 }
  0xda   :  { %v475_v61 = vunpack.c.l.b16 %v395_v58 }
  0xdb   :  { %v479_v25 = vunpack.c.l.b16 %v399_v22 }
  0xdc   :  { %v501_v0 = vpack.c.b16 %v476_v60, %v475_v61 }
  0xdd   :  { %v254_v26 = vpop.permute.xlu1 %253  ;;  %v195_v18 = vpop.permute.xlu0 %194 }
  0xde   :  { %vm313_vm13 = vcmp.eq.s32.totalorder %v254_v26, %v2847_v28  ;;  %vm304_vm9 = vcmp.eq.s32.totalorder %v195_v18, %v2847_v28 }
  0xdf   :  { %v2402_v30 = vsel %vm313_vm13, 1.0, %v2717_v32  ;;  %v2393_v20 = vsel %vm304_vm9, 1.0, %v2717_v32  ;;  %vm2273_vm9 = vcmask 1043459  }
  0xe0   :  { %v409_v33 = vpack.c.bf16 %v2402_v30, %v2402_v30  ;;  %v400_v23 = vpack.c.bf16 %v2393_v20, %v2393_v20 }
  0xe2   :  { %v489_v35 = vunpack.c.l.b16 %v409_v33  ;;  %v480_v26 = vunpack.c.l.b16 %v400_v23 }
  0xe4   :  { %v508_v36 = vpack.c.b16 %v490_v31, %v489_v35  ;;  %v503_v33 = vpack.c.b16 %v480_v26, %v479_v25 }
  0xe6   :  { %603 = vmatmul.bf16.gmra.mxu0 %v499_v34  ;;  %648 = vmatmul.bf16.gmra.mxu3 %v508_v36  ;;  %v286_v56 = vpop.permute.xlu2 %285 }
  0xe7   :  { %vm318_vm4 = vcmp.eq.s32.totalorder %v286_v56, %v2847_v28 }
  0xe8   :  { %v2407_v62 = vsel %vm318_vm4, 1.0, %v2717_v32 }
  0xe9   :  { %v414_v2 = vpack.c.bf16 %v2407_v62, %v2407_v62 }
  0xeb   :  { %v494_v7 = vunpack.c.l.b16 %v414_v2 }
  0xed   :  { %v182_v42 = vpop.permute.xlu1 %181  ;;  %v215_v35 = vpop.permute.xlu0 %214 }
  0xee   :  { %vm302_vm5 = vcmp.eq.s32.totalorder %v182_v42, %v2847_v28  ;;  %v208_v24 = vpop.permute.xlu2 %207  ;;  %vm307_vm13 = vcmp.eq.s32.totalorder %v215_v35, %v2847_v28 }
  0xef   :  { %v2391_v4 = vsel %vm302_vm5, 1.0, %v2717_v32  ;;  %vm306_vm10 = vcmp.eq.s32.totalorder %v208_v24, %v2847_v28  ;;  %v2396_v44 = vsel %vm307_vm13, 1.0, %v2717_v32  ;;  %vm1631_vm5 = vcmask 523264  }
  0xf0   :  { %v398_v9 = vpack.c.bf16 %v2391_v4, %v2391_v4  ;;  %v2395_v27 = vsel %vm306_vm10, 1.0, %v2717_v32  ;;  %vm2275_vm10 = vcmask 1044484   ;;  %vm2281_vm13 = vcmask 1047559  }
  0xf1   :  { %v402_v34 = vpack.c.bf16 %v2395_v27, %v2395_v27 }
  0xf2   :  { %v478_v14 = vunpack.c.l.b16 %v398_v9 }
  0xf3   :  { %v482_v38 = vunpack.c.l.b16 %v402_v34 }
  0xf4   :  { %v502_v17 = vpack.c.b16 %v478_v14, %v477_v15  ;;  %v403_v15 = vpack.c.bf16 %v2396_v44, %v2396_v44 }
  0xf5   :  { %v273_v49 = vpop.permute.xlu1 %272 }
  0xf6   :  { %608 = vmatmul.bf16.gmra.mxu0 %v500_v47  ;;  %vm316_vm3 = vcmp.eq.s32.totalorder %v273_v49, %v2847_v28  ;;  %v483_v25 = vunpack.c.l.b16 %v403_v15 }
  0xf7   :  { %v2405_v50 = vsel %vm316_vm3, 1.0, %v2717_v32 }
  0xf8   :  { %v412_v52 = vpack.c.bf16 %v2405_v50, %v2405_v50 }
  0xfa   :  { %v492_v55 = vunpack.c.l.b16 %v412_v52 }
  0xfc   :  { %v509_v59 = vpack.c.b16 %v492_v55, %v491_v51 }
  0xfe   :  { %653 = vmatmul.bf16.gmra.mxu3 %v509_v59  ;;  %v228_v26 = vpop.permute.xlu2 %227 }
  0xff   :  { %vm309_vm3 = vcmp.eq.s32.totalorder %v228_v26, %v2847_v28 }
 0x105   :  { %v280_v3 = vpop.permute.xlu1 %279 }
 0x106   :  { %613 = vmatmul.bf16.gmra.mxu0 %v501_v0  ;;  %vm317_vm7 = vcmp.eq.s32.totalorder %v280_v3, %v2847_v28 }
 0x107   :  { %v2406_v6 = vsel %vm317_vm7, 1.0, %v2717_v32  ;;  %vm2269_vm7 = vcmask 1041409  }
 0x108   :  { %v413_v8 = vpack.c.bf16 %v2406_v6, %v2406_v6 }
 0x10a   :  { %v493_v11 = vunpack.c.l.b16 %v413_v8 }
 0x10c   :  { %v510_v12 = vpack.c.b16 %v494_v7, %v493_v11 }
 0x10d   :  { %v202_v21 = vpop.permute.xlu1 %201 }
 0x10e   :  { %658 = vmatmul.bf16.gmra.mxu3 %v510_v12  ;;  %vm305_vm11 = vcmp.eq.s32.totalorder %v202_v21, %v2847_v28 }
 0x10f   :  { %v2394_v31 = vsel %vm305_vm11, 1.0, %v2717_v32  ;;  %vm2277_vm11 = vcmask 1045509  }
 0x110   :  { %v401_v36 = vpack.c.bf16 %v2394_v31, %v2394_v31 }
 0x112   :  { %v481_v39 = vunpack.c.l.b16 %v401_v36 }
 0x116   :  { %618 = vmatmul.bf16.gmra.mxu0 %v502_v17  ;;  %v504_v17 = vpack.c.b16 %v482_v38, %v481_v39 }
 0x11d   :  { %v221_v29 = vpop.permute.xlu1 %220 }
 0x11e   :  { %vm308_vm12 = vcmp.eq.s32.totalorder %v221_v29, %v2847_v28 }
 0x11f   :  { %v2397_v37 = vsel %vm308_vm12, 1.0, %v2717_v32  ;;  %vm2279_vm12 = vcmask 1046534  }
 0x120   :  { %v404_v43 = vpack.c.bf16 %v2397_v37, %v2397_v37 }
 0x122   :  { %v484_v24 = vunpack.c.l.b16 %v404_v43 }
 0x123   :  { %v2924_v30 = vpop.f32.mrf.mxu0 }
 0x124   :  { %v664_v40 = vpack.c.bf16 %v2924_v30, %v2924_v30  ;;  %v696_v41 = vrot.slane %v2924_v30, 1  ;;  %v795_v45 = vrot.slane %v2924_v30, 2  ;;  %v892_v46 = vrot.slane %v2924_v30, 3 }
 0x125   :  { %v989_v49 = vrot.slane %v2924_v30, 4  ;;  %v234_v29 = vpop.permute.xlu1 %233  ;;  %v505_v35 = vpack.c.b16 %v484_v24, %v483_v25 }
 0x126   :  { %623 = vmatmul.bf16.gmra.mxu0 %v503_v33  ;;  %v2960_v22 = vunpack.c.l.b16 %v664_v40  ;;  %vm310_vm4 = vcmp.eq.s32.totalorder %v234_v29, %v2847_v28 }
 0x12b   :  { %v586_v42 = vpop.f32.mrf.mxu0 }
 0x12c   :  { %v811_v47 = vrot.slane %v586_v42, 2  ;;  %v908_v48 = vrot.slane %v586_v42, 3  ;;  %v665_v50 = vpack.c.bf16 %v586_v42, %v586_v42  ;;  %v712_v51 = vrot.slane %v586_v42, 1 }
 0x12d   :  { %v1005_v52 = vrot.slane %v586_v42, 4 }
 0x12e   :  { %v925_v53 = vsel %vm924_vm15, %v892_v46, %v908_v48  ;;  %v941_v54 = vsel %vm924_vm15, %v908_v48, %v892_v46  ;;  %v828_v55 = vsel %vm827_vm0, %v795_v45, %v811_v47  ;;  %v844_v56 = vsel %vm827_vm0, %v811_v47, %v795_v45 }
 0x12f   :  { %v1022_v57 = vsel %vm1021_vm14, %v989_v49, %v1005_v52  ;;  %v1038_v58 = vsel %vm1021_vm14, %v1005_v52, %v989_v49  ;;  %v957_v59 = vpack.c.bf16 %v925_v53, %v925_v53  ;;  %v958_v60 = vpack.c.bf16 %v941_v54, %v941_v54 }
 0x130   :  { %v1054_v61 = vpack.c.bf16 %v1022_v57, %v1022_v57  ;;  %v1055_v62 = vpack.c.bf16 %v1038_v58, %v1038_v58  ;;  %v860_v63 = vpack.c.bf16 %v828_v55, %v828_v55  ;;  %v861_v0 = vpack.c.bf16 %v844_v56, %v844_v56 }
 0x131   :  { %v1422_v2 = vunpack.c.l.b16 %v957_v59  ;;  %v1423_v3 = vunpack.c.l.b16 %v958_v60  ;;  %v731_v4 = vsel %vm730_vm1, %v696_v41, %v712_v51  ;;  %v747_v5 = vsel %vm730_vm1, %v712_v51, %v696_v41 }
 0x132   :  { %v1534_v6 = vunpack.c.l.b16 %v1054_v61  ;;  %v1535_v7 = vunpack.c.l.b16 %v1055_v62  ;;  %v1310_v8 = vunpack.c.l.b16 %v860_v63  ;;  %v1311_v9 = vunpack.c.l.b16 %v861_v0 }
 0x133   :  { %v2957_v10 = vpop.f32.mrf.mxu0  ;;  %v1454_v11 = vpack.c.b16 %v1423_v3, %v1422_v2  ;;  %v763_v12 = vpack.c.bf16 %v731_v4, %v731_v4  ;;  %v764_v14 = vpack.c.bf16 %v747_v5, %v747_v5  ;;  %v2962_v23 = vunpack.c.l.b16 %v665_v50 }
 0x134   :  { %v1566_v18 = vpack.c.b16 %v1535_v7, %v1534_v6  ;;  %v1342_v19 = vpack.c.b16 %v1311_v9, %v1310_v8  ;;  %v666_v31 = vpack.c.bf16 %v2957_v10, %v2957_v10  ;;  %v697_v33 = vrot.slane %v2957_v10, 1 }
 0x135   :  { %1470 = vrot.lane.b32.xlu1 %v1454_v11, %s2718_s4  ;;  %v1198_v20 = vunpack.c.l.b16 %v763_v12  ;;  %v1199_v21 = vunpack.c.l.b16 %v764_v14  ;;  %v1150_v30 = vpack.c.b16 %v2962_v23, %v2960_v22  ;;  %v796_v36 = vrot.slane %v2957_v10, 2 }
 0x136   :  { %628 = vmatmul.bf16.gmra.mxu0 %v504_v17  ;;  %2480 = vmatmul.msk.bf16.vlgmr.msra.gmra.mxu2 %vm1582_vm2, %v1566_v18  ;;  %v893_v37 = vrot.slane %v2957_v10, 3  ;;  %v990_v40 = vrot.slane %v2957_v10, 4  ;;  %v2398_v6 = vsel %vm309_vm3, 1.0, %v2717_v32  ;;  %v2399_v7 = vsel %vm310_vm4, 1.0, %v2717_v32 }
 0x137   :  { %1358 = vrot.lane.b32.xlu0 %v1342_v19, %s2715_s16  ;;  %v1230_v27 = vpack.c.b16 %v1199_v21, %v1198_v20  ;;  %v3003_v8 = vunpack.c.l.b16 %v666_v31  ;;  %v405_v15 = vpack.c.bf16 %v2398_v6, %v2398_v6  ;;  %v406_v17 = vpack.c.bf16 %v2399_v7, %v2399_v7 }
 0x139   :  { %1246 = vrot.lane.b32.xlu2 %v1230_v27, %s2719_s0  ;;  %v485_v32 = vunpack.c.l.b16 %v405_v15  ;;  %v486_v18 = vunpack.c.l.b16 %v406_v17 }
 0x13b   :  { %v591_v34 = vpop.f32.mrf.mxu0 }
 0x13c   :  { %v812_v38 = vrot.slane %v591_v34, 2  ;;  %v909_v39 = vrot.slane %v591_v34, 3  ;;  %v667_v41 = vpack.c.bf16 %v591_v34, %v591_v34  ;;  %v713_v42 = vrot.slane %v591_v34, 1 }
 0x13d   :  { %v1006_v43 = vrot.slane %v591_v34, 4 }
 0x13e   :  { %v926_v44 = vsel %vm924_vm15, %v893_v37, %v909_v39  ;;  %v942_v45 = vsel %vm924_vm15, %v909_v39, %v893_v37  ;;  %v829_v46 = vsel %vm827_vm0, %v796_v36, %v812_v38  ;;  %v845_v47 = vsel %vm827_vm0, %v812_v38, %v796_v36 }
 0x13f   :  { %v1023_v48 = vsel %vm1021_vm14, %v990_v40, %v1006_v43  ;;  %v1039_v49 = vsel %vm1021_vm14, %v1006_v43, %v990_v40  ;;  %v959_v50 = vpack.c.bf16 %v926_v44, %v926_v44  ;;  %v960_v51 = vpack.c.bf16 %v942_v45, %v942_v45 }
 0x140   :  { %v1056_v52 = vpack.c.bf16 %v1023_v48, %v1023_v48  ;;  %v1057_v53 = vpack.c.bf16 %v1039_v49, %v1039_v49  ;;  %v862_v54 = vpack.c.bf16 %v829_v46, %v829_v46  ;;  %v863_v55 = vpack.c.bf16 %v845_v47, %v845_v47 }
 0x141   :  { %v1424_v56 = vunpack.c.l.b16 %v959_v50  ;;  %v1425_v57 = vunpack.c.l.b16 %v960_v51  ;;  %v732_v58 = vsel %vm730_vm1, %v697_v33, %v713_v42  ;;  %v748_v59 = vsel %vm730_vm1, %v713_v42, %v697_v33 }
 0x142   :  { %v1536_v60 = vunpack.c.l.b16 %v1056_v52  ;;  %v1537_v61 = vunpack.c.l.b16 %v1057_v53  ;;  %v1312_v62 = vunpack.c.l.b16 %v862_v54  ;;  %v1313_v63 = vunpack.c.l.b16 %v863_v55 }
 0x143   :  { %v2993_v0 = vpop.f32.mrf.mxu0  ;;  %v1455_v2 = vpack.c.b16 %v1425_v57, %v1424_v56  ;;  %v765_v3 = vpack.c.bf16 %v732_v58, %v732_v58  ;;  %v766_v4 = vpack.c.bf16 %v748_v59, %v748_v59  ;;  %v2995_v5 = vunpack.c.l.b16 %v667_v41 }
 0x144   :  { %v1567_v9 = vpack.c.b16 %v1537_v61, %v1536_v60  ;;  %v1343_v10 = vpack.c.b16 %v1313_v63, %v1312_v62  ;;  %v797_v20 = vrot.slane %v2993_v0, 2  ;;  %v894_v21 = vrot.slane %v2993_v0, 3 }
 0x145   :  { %1472 = vrot.lane.b32.xlu1 %v1455_v2, %s2718_s4  ;;  %v1200_v11 = vunpack.c.l.b16 %v765_v3  ;;  %v1201_v12 = vunpack.c.l.b16 %v766_v4  ;;  %v698_v26 = vrot.slane %v2993_v0, 1  ;;  %v991_v27 = vrot.slane %v2993_v0, 4 }
 0x146   :  { %633 = vmatmul.bf16.gmra.mxu0 %v505_v35  ;;  %2481 = vmatmul.msk.bf16.gmra.mxu2 %vm1582_vm2, %v1567_v9  ;;  %v668_v58 = vpack.c.bf16 %v2993_v0, %v2993_v0  ;;  %v506_v59 = vpack.c.b16 %v486_v18, %v485_v32 }
 0x147   :  { %1360 = vrot.lane.b32.xlu0 %v1343_v10, %s2715_s16  ;;  %v1231_v28 = vpack.c.b16 %v1201_v12, %v1200_v11 }
 0x148   :  { %v3042_v6 = vunpack.c.l.b16 %v668_v58 }
 0x149   :  { %1248 = vrot.lane.b32.xlu2 %v1231_v28, %s2719_s0  ;;  %v3036_v2 = vpop.f32.mrf.mxu3 }
 0x14a   :  { %v708_v11 = vrot.slane %v3036_v2, 1 }
 0x14b   :  { %v596_v19 = vpop.f32.mrf.mxu0 }
 0x14c   :  { %v813_v24 = vrot.slane %v596_v19, 2  ;;  %v910_v25 = vrot.slane %v596_v19, 3  ;;  %v714_v29 = vrot.slane %v596_v19, 1  ;;  %v1007_v31 = vrot.slane %v596_v19, 4 }
 0x14d   :  { %v669_v53 = vpack.c.bf16 %v596_v19, %v596_v19 }
 0x14e   :  { %v927_v33 = vsel %vm924_vm15, %v894_v21, %v910_v25  ;;  %v943_v34 = vsel %vm924_vm15, %v910_v25, %v894_v21  ;;  %v830_v35 = vsel %vm827_vm0, %v797_v20, %v813_v24  ;;  %v846_v36 = vsel %vm827_vm0, %v813_v24, %v797_v20 }
 0x14f   :  { %v1024_v37 = vsel %vm1021_vm14, %v991_v27, %v1007_v31  ;;  %v1040_v38 = vsel %vm1021_vm14, %v1007_v31, %v991_v27  ;;  %v961_v39 = vpack.c.bf16 %v927_v33, %v927_v33  ;;  %v962_v40 = vpack.c.bf16 %v943_v34, %v943_v34 }
 0x150   :  { %v1058_v41 = vpack.c.bf16 %v1024_v37, %v1024_v37  ;;  %v1059_v42 = vpack.c.bf16 %v1040_v38, %v1040_v38  ;;  %v864_v43 = vpack.c.bf16 %v830_v35, %v830_v35  ;;  %v865_v44 = vpack.c.bf16 %v846_v36, %v846_v36 }
 0x151   :  { %v1426_v45 = vunpack.c.l.b16 %v961_v39  ;;  %v1427_v46 = vunpack.c.l.b16 %v962_v40  ;;  %v733_v47 = vsel %vm730_vm1, %v698_v26, %v714_v29  ;;  %v749_v48 = vsel %vm730_vm1, %v714_v29, %v698_v26  ;;  %v3066_v38 = vpop.f32.mrf.mxu3 }
 0x152   :  { %v1538_v49 = vunpack.c.l.b16 %v1058_v41  ;;  %v1539_v50 = vunpack.c.l.b16 %v1059_v42  ;;  %v1314_v51 = vunpack.c.l.b16 %v864_v43  ;;  %v1315_v52 = vunpack.c.l.b16 %v865_v44 }
 0x153   :  { %v3031_v54 = vpop.f32.mrf.mxu0  ;;  %v1456_v55 = vpack.c.b16 %v1427_v46, %v1426_v45  ;;  %v767_v56 = vpack.c.bf16 %v733_v47, %v733_v47  ;;  %v768_v57 = vpack.c.bf16 %v749_v48, %v749_v48  ;;  %v3040_v3 = vunpack.c.l.b16 %v669_v53 }
 0x154   :  { %v1568_v60 = vpack.c.b16 %v1539_v50, %v1538_v49  ;;  %v1344_v61 = vpack.c.b16 %v1315_v52, %v1314_v51  ;;  %v670_v7 = vpack.c.bf16 %v3031_v54, %v3031_v54  ;;  %v699_v9 = vrot.slane %v3031_v54, 1 }
 0x155   :  { %1474 = vrot.lane.b32.xlu1 %v1456_v55, %s2718_s4  ;;  %v1202_v62 = vunpack.c.l.b16 %v767_v56  ;;  %v1203_v63 = vunpack.c.l.b16 %v768_v57  ;;  %v798_v12 = vrot.slane %v3031_v54, 2  ;;  %v895_v15 = vrot.slane %v3031_v54, 3 }
 0x156   :  { %638 = vmatmul.bf16.gmra.mxu0 %v506_v59  ;;  %2482 = vmatmul.msk.bf16.gmra.mxu2 %vm1582_vm2, %v1568_v60  ;;  %v992_v32 = vrot.slane %v3031_v54, 4  ;;  %v724_v51 = vrot.slane %v3066_v38, 1  ;;  %v904_v52 = vrot.slane %v3036_v2, 3  ;;  %v920_v53 = vrot.slane %v3066_v38, 3 }
 0x157   :  { %1362 = vrot.lane.b32.xlu0 %v1344_v61, %s2715_s16  ;;  %v1232_v4 = vpack.c.b16 %v1203_v63, %v1202_v62  ;;  %v3078_v58 = vunpack.c.l.b16 %v670_v7  ;;  %v807_v60 = vrot.slane %v3036_v2, 2  ;;  %v823_v61 = vrot.slane %v3066_v38, 2 }
 0x158   :  { %v743_v62 = vsel %vm730_vm1, %v708_v11, %v724_v51  ;;  %v759_v63 = vsel %vm730_vm1, %v724_v51, %v708_v11  ;;  %v3092_v7 = vsel %vm924_vm15, %v904_v52, %v920_v53  ;;  %v3101_v11 = vsel %vm924_vm15, %v920_v53, %v904_v52 }
 0x159   :  { %1250 = vrot.lane.b32.xlu2 %v1232_v4, %s2719_s0 }
 0x15b   :  { %v601_v10 = vpop.f32.mrf.mxu0 }
 0x15c   :  { %v814_v17 = vrot.slane %v601_v10, 2  ;;  %v911_v28 = vrot.slane %v601_v10, 3  ;;  %v671_v18 = vpack.c.bf16 %v601_v10, %v601_v10  ;;  %v715_v19 = vrot.slane %v601_v10, 1 }
 0x15d   :  { %v1008_v20 = vrot.slane %v601_v10, 4  ;;  %v1001_v10 = vrot.slane %v3036_v2, 4 }
 0x15e   :  { %v928_v21 = vsel %vm924_vm15, %v895_v15, %v911_v28  ;;  %v944_v24 = vsel %vm924_vm15, %v911_v28, %v895_v15  ;;  %v831_v25 = vsel %vm827_vm0, %v798_v12, %v814_v17  ;;  %v847_v26 = vsel %vm827_vm0, %v814_v17, %v798_v12 }
 0x15f   :  { %v1025_v27 = vsel %vm1021_vm14, %v992_v32, %v1008_v20  ;;  %v1041_v29 = vsel %vm1021_vm14, %v1008_v20, %v992_v32  ;;  %v963_v31 = vpack.c.bf16 %v928_v21, %v928_v21  ;;  %v964_v33 = vpack.c.bf16 %v944_v24, %v944_v24 }
 0x160   :  { %v1060_v34 = vpack.c.bf16 %v1025_v27, %v1025_v27  ;;  %v1061_v35 = vpack.c.bf16 %v1041_v29, %v1041_v29  ;;  %v866_v36 = vpack.c.bf16 %v831_v25, %v831_v25  ;;  %v867_v37 = vpack.c.bf16 %v847_v26, %v847_v26 }
 0x161   :  { %v1428_v39 = vunpack.c.l.b16 %v963_v31  ;;  %v1429_v40 = vunpack.c.l.b16 %v964_v33  ;;  %v734_v41 = vsel %vm730_vm1, %v699_v9, %v715_v19  ;;  %v750_v42 = vsel %vm730_vm1, %v715_v19, %v699_v9 }
 0x162   :  { %v1540_v43 = vunpack.c.l.b16 %v1060_v34  ;;  %v1541_v44 = vunpack.c.l.b16 %v1061_v35  ;;  %v1316_v45 = vunpack.c.l.b16 %v866_v36  ;;  %v1317_v46 = vunpack.c.l.b16 %v867_v37  ;;  %v2543_v34 = vld [vmem:[%s4134_s2 + $0x38] sm:$0xff] }
 0x163   :  { %v3072_v47 = vpop.f32.mrf.mxu0  ;;  %v1457_v48 = vpack.c.b16 %v1429_v40, %v1428_v39  ;;  %v769_v49 = vpack.c.bf16 %v734_v41, %v734_v41  ;;  %v770_v50 = vpack.c.bf16 %v750_v42, %v750_v42  ;;  %v3080_v59 = vunpack.c.l.b16 %v671_v18  ;;  %1845 = vmatpush.bf16.msra.mxu1 %v2543_v34  ;;  %2562 = vmatpush.bf16.msrb.mxu3 %v2543_v34 }
 0x164   :  { %v1569_v54 = vpack.c.b16 %v1541_v44, %v1540_v43  ;;  %v1345_v55 = vpack.c.b16 %v1317_v46, %v1316_v45  ;;  %v1017_v12 = vrot.slane %v3066_v38, 4  ;;  %v787_v15 = vpack.c.bf16 %v743_v62, %v743_v62  ;;  %v2542_v44 = vld [vmem:[%s4134_s2 + $0x30] sm:$0xff] }
 0x165   :  { %1476 = vrot.lane.b32.xlu1 %v1457_v48, %s2718_s4  ;;  %v1204_v56 = vunpack.c.l.b16 %v769_v49  ;;  %v1205_v57 = vunpack.c.l.b16 %v770_v50  ;;  %v788_v17 = vpack.c.bf16 %v759_v63, %v759_v63  ;;  %v981_v32 = vpack.c.bf16 %v3092_v7, %v3092_v7  ;;  %v2540_v7 = vld [vmem:[%s4134_s2 + $0x20] sm:$0xff] }
 0x166   :  { %2483 = vmatmul.msk.bf16.gmra.mxu2 %vm1582_vm2, %v1569_v54  ;;  %1364 = vrot.lane.b32.xlu0 %v1345_v55, %s2715_s16  ;;  %v3107_v18 = vsel %vm827_vm0, %v807_v60, %v823_v61  ;;  %v3111_v19 = vsel %vm827_vm0, %v823_v61, %v807_v60  ;;  %v799_v20 = vrot.slane %v3072_v47, 2  ;;  %v896_v21 = vrot.slane %v3072_v47, 3 }
 0x167   :  { %v1233_v4 = vpack.c.b16 %v1205_v57, %v1204_v56  ;;  %v700_v27 = vrot.slane %v3072_v47, 1  ;;  %v993_v29 = vrot.slane %v3072_v47, 4  ;;  %1846 = vmatpush.bf16.msra.mxu1 %v2542_v44  ;;  %2563 = vmatpush.bf16.msrb.mxu3 %v2542_v44 }
 0x169   :  { %1252 = vrot.lane.b32.xlu2 %v1233_v4, %s2719_s0  ;;  %v3115_v26 = vpop.f32.mrf.mxu3 }
 0x16a   :  { %v808_v44 = vrot.slane %v3115_v26, 2 }
 0x16b   :  { %v606_v28 = vpop.f32.mrf.mxu0 }
 0x16c   :  { %v815_v24 = vrot.slane %v606_v28, 2  ;;  %v912_v25 = vrot.slane %v606_v28, 3  ;;  %v716_v31 = vrot.slane %v606_v28, 1  ;;  %v1009_v33 = vrot.slane %v606_v28, 4 }
 0x16d   :  { %v673_v60 = vpack.c.bf16 %v606_v28, %v606_v28 }
 0x16e   :  { %v929_v35 = vsel %vm924_vm15, %v896_v21, %v912_v25  ;;  %v945_v36 = vsel %vm924_vm15, %v912_v25, %v896_v21  ;;  %v832_v37 = vsel %vm827_vm0, %v799_v20, %v815_v24  ;;  %v848_v39 = vsel %vm827_vm0, %v815_v24, %v799_v20 }
 0x16f   :  { %v1026_v40 = vsel %vm1021_vm14, %v993_v29, %v1009_v33  ;;  %v1042_v41 = vsel %vm1021_vm14, %v1009_v33, %v993_v29  ;;  %v965_v42 = vpack.c.bf16 %v929_v35, %v929_v35  ;;  %v966_v43 = vpack.c.bf16 %v945_v36, %v945_v36 }
 0x170   :  { %v1062_v45 = vpack.c.bf16 %v1026_v40, %v1026_v40  ;;  %v1063_v46 = vpack.c.bf16 %v1042_v41, %v1042_v41  ;;  %v868_v48 = vpack.c.bf16 %v832_v37, %v832_v37  ;;  %v869_v49 = vpack.c.bf16 %v848_v39, %v848_v39 }
 0x171   :  { %v1430_v50 = vunpack.c.l.b16 %v965_v42  ;;  %v1431_v51 = vunpack.c.l.b16 %v966_v43  ;;  %v735_v52 = vsel %vm730_vm1, %v700_v27, %v716_v31  ;;  %v751_v53 = vsel %vm730_vm1, %v716_v31, %v700_v27  ;;  %v2541_v31 = vld [vmem:[%s4134_s2 + $0x28] sm:$0xff]  ;;  %v3157_v33 = vpop.f32.mrf.mxu3 }
 0x172   :  { %v1542_v54 = vunpack.c.l.b16 %v1062_v45  ;;  %v1543_v55 = vunpack.c.l.b16 %v1063_v46  ;;  %v1318_v56 = vunpack.c.l.b16 %v868_v48  ;;  %v1319_v57 = vunpack.c.l.b16 %v869_v49  ;;  %1847 = vmatpush.bf16.msra.mxu1 %v2541_v31  ;;  %2564 = vmatpush.bf16.msrb.mxu3 %v2541_v31 }
 0x173   :  { %v3141_v61 = vpop.f32.mrf.mxu0  ;;  %v1458_v62 = vpack.c.b16 %v1431_v51, %v1430_v50  ;;  %v771_v63 = vpack.c.bf16 %v735_v52, %v735_v52  ;;  %v772_v4 = vpack.c.bf16 %v751_v53, %v751_v53  ;;  %v672_v20 = vpack.c.bf16 %v3072_v47, %v3072_v47 }
 0x174   :  { %v3145_v21 = vunpack.c.l.b16 %v787_v15  ;;  %v3147_v24 = vunpack.c.l.b16 %v788_v17  ;;  %v982_v25 = vpack.c.bf16 %v3101_v11, %v3101_v11  ;;  %v1570_v27 = vpack.c.b16 %v1543_v55, %v1542_v54 }
 0x175   :  { %1478 = vrot.lane.b32.xlu1 %v1458_v62, %s2718_s4  ;;  %v1346_v28 = vpack.c.b16 %v1319_v57, %v1318_v56  ;;  %v1206_v29 = vunpack.c.l.b16 %v771_v63  ;;  %v884_v47 = vpack.c.bf16 %v3107_v18, %v3107_v18  ;;  %v1207_v15 = vunpack.c.l.b16 %v772_v4  ;;  %v2539_v62 = vld [vmem:[%s4134_s2 + $0x18] sm:$0xff] }
 0x176   :  { %v885_v17 = vpack.c.bf16 %v3111_v19, %v3111_v19  ;;  %2484 = vmatmul.msk.bf16.gmra.mxu2 %vm1582_vm2, %v1570_v27  ;;  %v3167_v35 = vunpack.c.l.b16 %v673_v60  ;;  %v3175_v18 = vsel %vm1021_vm14, %v1001_v10, %v1017_v12  ;;  %v1242_v36 = vpack.c.b16 %v3147_v24, %v3145_v21  ;;  %1848 = vmatpush.bf16.msra.mxu1 %v2540_v7 }
 0x177   :  { %1366 = vrot.lane.b32.xlu0 %v1346_v28, %s2715_s16  ;;  %v1234_v19 = vpack.c.b16 %v1207_v15, %v1206_v29  ;;  %v3182_v37 = vunpack.c.l.b16 %v981_v32  ;;  %v3184_v39 = vunpack.c.l.b16 %v672_v20  ;;  %v709_v40 = vrot.slane %v3115_v26, 1  ;;  %2565 = vmatpush.bf16.msrb.mxu3 %v2540_v7 }
 0x178   :  { %v725_v41 = vrot.slane %v3157_v33, 1  ;;  %v3188_v42 = vunpack.c.l.b16 %v982_v25  ;;  %v3190_v43 = vunpack.c.l.b16 %v884_v47  ;;  %v905_v45 = vrot.slane %v3115_v26, 3 }
 0x179   :  { %1254 = vrot.lane.b32.xlu2 %v1234_v19, %s2719_s0  ;;  %v3198_v32 = vunpack.c.l.b16 %v885_v17  ;;  %v701_v48 = vrot.slane %v3141_v61, 1  ;;  %v800_v49 = vrot.slane %v3141_v61, 2  ;;  %v897_v50 = vrot.slane %v3141_v61, 3 }
 0x17a   :  { %v994_v51 = vrot.slane %v3141_v61, 4  ;;  %v824_v55 = vrot.slane %v3157_v33, 2  ;;  %v921_v56 = vrot.slane %v3157_v33, 3  ;;  %v744_v63 = vsel %vm730_vm1, %v709_v40, %v725_v41  ;;  %1849 = vmatpush.bf16.msra.mxu1 %v2539_v62 }
 0x17b   :  { %v3206_v52 = vpop.f32.mrf.mxu0  ;;  %v3221_v4 = vsel %vm730_vm1, %v725_v41, %v709_v40  ;;  %2566 = vmatpush.bf16.msrb.mxu3 %v2539_v62 }
 0x17c   :  { %v816_v53 = vrot.slane %v3206_v52, 2  ;;  %v913_v54 = vrot.slane %v3206_v52, 3  ;;  %v717_v57 = vrot.slane %v3206_v52, 1  ;;  %v1010_v60 = vrot.slane %v3206_v52, 4 }
 0x17d   :  { %v675_v62 = vpack.c.bf16 %v3206_v52, %v3206_v52  ;;  %v790_v52 = vpack.c.bf16 %v3221_v4, %v3221_v4 }
 0x17e   :  { %v930_v20 = vsel %vm924_vm15, %v897_v50, %v913_v54  ;;  %v946_v25 = vsel %vm924_vm15, %v913_v54, %v897_v50  ;;  %v833_v27 = vsel %vm827_vm0, %v800_v49, %v816_v53  ;;  %v849_v28 = vsel %vm827_vm0, %v816_v53, %v800_v49 }
 0x17f   :  { %v1027_v29 = vsel %vm1021_vm14, %v994_v51, %v1010_v60  ;;  %v1043_v31 = vsel %vm1021_vm14, %v1010_v60, %v994_v51  ;;  %v967_v47 = vpack.c.bf16 %v930_v20, %v930_v20  ;;  %v968_v15 = vpack.c.bf16 %v946_v25, %v946_v25  ;;  %v2538_v25 = vld [vmem:[%s4134_s2 + $0x10] sm:$0xff] }
 0x180   :  { %v1064_v17 = vpack.c.bf16 %v1027_v29, %v1027_v29  ;;  %v1065_v19 = vpack.c.bf16 %v1043_v31, %v1043_v31  ;;  %v870_v40 = vpack.c.bf16 %v833_v27, %v833_v27  ;;  %v871_v41 = vpack.c.bf16 %v849_v28, %v849_v28  ;;  %1850 = vmatpush.bf16.msra.mxu1 %v2538_v25 }
 0x181   :  { %v1432_v7 = vunpack.c.l.b16 %v967_v47  ;;  %v1433_v50 = vunpack.c.l.b16 %v968_v15  ;;  %v736_v54 = vsel %vm730_vm1, %v701_v48, %v717_v57  ;;  %v752_v49 = vsel %vm730_vm1, %v717_v57, %v701_v48  ;;  %v3239_v53 = vpop.f32.mrf.mxu3  ;;  %2567 = vmatpush.bf16.msrb.mxu3 %v2538_v25 }
 0x182   :  { %v1544_v46 = vunpack.c.l.b16 %v1064_v17  ;;  %v1545_v51 = vunpack.c.l.b16 %v1065_v19  ;;  %v1320_v60 = vunpack.c.l.b16 %v870_v40  ;;  %v1321_v20 = vunpack.c.l.b16 %v871_v41 }
 0x183   :  { %v3244_v27 = vpop.f32.mrf.mxu0  ;;  %v1459_v28 = vpack.c.b16 %v1433_v50, %v1432_v7  ;;  %v773_v29 = vpack.c.bf16 %v736_v54, %v736_v54  ;;  %v774_v31 = vpack.c.bf16 %v752_v49, %v752_v49  ;;  %v938_v48 = vsel %vm924_vm15, %v905_v45, %v921_v56 }
 0x184   :  { %v674_v57 = vpack.c.bf16 %v3141_v61, %v3141_v61  ;;  %v1466_v47 = vpack.c.b16 %v3188_v42, %v3182_v37  ;;  %v1354_v15 = vpack.c.b16 %v3198_v32, %v3190_v43  ;;  %v1571_v17 = vpack.c.b16 %v1545_v51, %v1544_v46  ;;  %v2537_v61 = vld [vmem:[%s4134_s2 + $0x8] sm:$0xff] }
 0x185   :  { %1480 = vrot.lane.b32.xlu1 %v1459_v28, %s2718_s4  ;;  %v1347_v19 = vpack.c.b16 %v1321_v20, %v1320_v60  ;;  %v1208_v40 = vunpack.c.l.b16 %v773_v29  ;;  %v789_v41 = vpack.c.bf16 %v744_v63, %v744_v63  ;;  %v1209_v7 = vunpack.c.l.b16 %v774_v31  ;;  %1851 = vmatpush.bf16.msra.mxu1 %v2537_v61 }
 0x186   :  { %v3268_v50 = vsel %vm924_vm15, %v921_v56, %v905_v45  ;;  %v983_v46 = vpack.c.bf16 %v938_v48, %v938_v48  ;;  %2485 = vmatmul.msk.bf16.gmra.mxu2 %vm1582_vm2, %v1571_v17  ;;  %v3278_v63 = vsel %vm827_vm0, %v808_v44, %v824_v55  ;;  %v3284_v45 = vsel %vm827_vm0, %v824_v55, %v808_v44 }
 0x187   :  { %1368 = vrot.lane.b32.xlu0 %v1347_v19, %s2715_s16  ;;  %v1235_v4 = vpack.c.b16 %v1209_v7, %v1208_v40  ;;  %v3287_v49 = vunpack.c.l.b16 %v675_v62  ;;  %v3295_v51 = vsel %vm1021_vm14, %v1017_v12, %v1001_v10  ;;  %v1003_v60 = vrot.slane %v3239_v53, 4  ;;  %2568 = vmatpush.bf16.msrb.mxu3 %v2537_v61  ;;  %v2536_v10 = vld [vmem:[%s4134_s2] sm:$0xff] }
 0x188   :  { %v3300_v44 = vunpack.c.l.b16 %v789_v41  ;;  %v984_v55 = vpack.c.bf16 %v3268_v50, %v3268_v50  ;;  %v3304_v25 = vunpack.c.l.b16 %v674_v57  ;;  %v3307_v28 = vunpack.c.l.b16 %v790_v52 }
 0x189   :  { %v3298_v20 = vpop.f32.mrf.mxu3  ;;  %1256 = vrot.lane.b32.xlu2 %v1235_v4, %s2719_s0  ;;  %v3312_v12 = vunpack.c.l.b16 %v983_v46  ;;  %v886_v29 = vpack.c.bf16 %v3278_v63, %v3278_v63  ;;  %v887_v31 = vpack.c.bf16 %v3284_v45, %v3284_v45  ;;  %v702_v48 = vrot.slane %v3244_v27, 1  ;;  %1852 = vmatpush.bf16.msra.mxu1 %v2536_v10 }
 0x18a   :  { %v801_v57 = vrot.slane %v3244_v27, 2  ;;  %v1019_v17 = vrot.slane %v3298_v20, 4  ;;  %v898_v40 = vrot.slane %v3244_v27, 3  ;;  %v995_v41 = vrot.slane %v3244_v27, 4 }
 0x18b   :  { %v3320_v62 = vpop.f32.mrf.mxu0  ;;  %2569 = vmatpush.bf16.msrb.mxu3 %v2536_v10 }
 0x18c   :  { %v718_v61 = vrot.slane %v3320_v62, 1  ;;  %v817_v7 = vrot.slane %v3320_v62, 2  ;;  %v914_v52 = vrot.slane %v3320_v62, 3  ;;  %v1011_v50 = vrot.slane %v3320_v62, 4 }
 0x18d   :  { %v3333_v46 = vsel %vm1021_vm14, %v1003_v60, %v1019_v17  ;;  %v3337_v63 = vsel %vm1021_vm14, %v1019_v17, %v1003_v60 }
 0x18e   :  { %v834_v45 = vsel %vm827_vm0, %v801_v57, %v817_v7  ;;  %v850_v4 = vsel %vm827_vm0, %v817_v7, %v801_v57  ;;  %v737_v19 = vsel %vm730_vm1, %v702_v48, %v718_v61  ;;  %v753_v9 = vsel %vm730_vm1, %v718_v61, %v702_v48 }
 0x18f   :  { %2570 = vmatpush.bf16.msra.mxu3 %v2908_v13  ;;  %1270 = vrot.lane.b32.xlu0 %v1242_v36, %s2719_s0  ;;  %v1028_v60 = vsel %vm1021_vm14, %v995_v41, %v1011_v50  ;;  %v1044_v10 = vsel %vm1021_vm14, %v1011_v50, %v995_v41  ;;  %v872_v57 = vpack.c.bf16 %v834_v45, %v834_v45 }
 0x190   :  { %v873_v17 = vpack.c.bf16 %v850_v4, %v850_v4  ;;  %v1066_v7 = vpack.c.bf16 %v1028_v60, %v1028_v60  ;;  %v1067_v0 = vpack.c.bf16 %v1044_v10, %v1044_v10  ;;  %v775_v54 = vpack.c.bf16 %v737_v19, %v737_v19 }
 0x191   :  { %v776_v56 = vpack.c.bf16 %v753_v9, %v753_v9  ;;  %v1322_v48 = vunpack.c.l.b16 %v872_v57  ;;  %v931_v13 = vsel %vm924_vm15, %v898_v40, %v914_v52  ;;  %v947_v21 = vsel %vm924_vm15, %v914_v52, %v898_v40  ;;  %v3360_v24 = vpop.f32.mrf.mxu3 }
 0x192   :  { %v1323_v61 = vunpack.c.l.b16 %v873_v17  ;;  %v1546_v36 = vunpack.c.l.b16 %v1066_v7  ;;  %v1547_v34 = vunpack.c.l.b16 %v1067_v0  ;;  %v1210_v11 = vunpack.c.l.b16 %v775_v54 }
 0x193   :  { %v1211_v41 = vunpack.c.l.b16 %v776_v56  ;;  %2571 = vmatpush.bf16.msra.mxu3 %v2914_v16  ;;  %v3363_v50 = vpop.f32.mrf.mxu0  ;;  %v969_v9 = vpack.c.bf16 %v931_v13, %v931_v13  ;;  %v970_v45 = vpack.c.bf16 %v947_v21, %v947_v21  ;;  %v3365_v4 = vunpack.c.l.b16 %v984_v55 }
 0x194   :  { %v1348_v19 = vpack.c.b16 %v1323_v61, %v1322_v48  ;;  %v676_v40 = vpack.c.bf16 %v3244_v27, %v3244_v27  ;;  %v3371_v52 = vunpack.c.l.b16 %v886_v29  ;;  %v3373_v0 = vunpack.c.l.b16 %v887_v31 }
 0x195   :  { %v710_v54 = vrot.slane %v3239_v53, 1  ;;  %v1572_v16 = vpack.c.b16 %v1547_v34, %v1546_v36  ;;  %v1236_v56 = vpack.c.b16 %v1211_v41, %v1210_v11  ;;  %v726_v10 = vrot.slane %v3298_v20, 1  ;;  %v1247_v34 = vpop.permute.xlu2 %1246 }
 0x196   :  { %1370 = vrot.lane.b32.xlu1 %v1348_v19, %s2715_s16  ;;  %v1434_v57 = vunpack.c.l.b16 %v969_v9  ;;  %v1435_v17 = vunpack.c.l.b16 %v970_v45  ;;  %v1243_v7 = vpack.c.b16 %v3307_v28, %v3300_v44  ;;  %v809_v29 = vrot.slane %v3239_v53, 2 }
 0x197   :  { %v906_v31 = vrot.slane %v3239_v53, 3  ;;  %2486 = vmatmul.msk.bf16.gmra.mxu2 %vm1582_vm2, %v1572_v16  ;;  %1258 = vrot.lane.b32.xlu2 %v1236_v56, %s2719_s0  ;;  %v1467_v11 = vpack.c.b16 %v3365_v4, %v3312_v12  ;;  %v3391_v44 = vunpack.c.l.b16 %v676_v40  ;;  %v922_v13 = vrot.slane %v3298_v20, 3 }
 0x198   :  { %v1460_v48 = vpack.c.b16 %v1435_v17, %v1434_v57  ;;  %v745_v21 = vsel %vm730_vm1, %v710_v54, %v726_v10  ;;  %v761_v36 = vsel %vm730_vm1, %v726_v10, %v710_v54  ;;  %v703_v9 = vrot.slane %v3363_v50, 1 }
 0x199   :  { %v802_v45 = vrot.slane %v3363_v50, 2  ;;  %v825_v40 = vrot.slane %v3298_v20, 2  ;;  %v3408_v16 = vpop.f32.mrf.mxu3  ;;  %v3414_v54 = vsel %vm1582_vm2, %v1150_v30, %v1247_v34  ;;  %v899_v56 = vrot.slane %v3363_v50, 3 }
 0x19a   :  { %1482 = vrot.lane.b32.xlu0 %v1460_v48, %s2718_s4  ;;  %v996_v10 = vrot.slane %v3363_v50, 4  ;;  %v711_v17 = vrot.slane %v3360_v24, 1  ;;  %v791_v60 = vpack.c.bf16 %v745_v21, %v745_v21  ;;  %v792_v55 = vpack.c.bf16 %v761_v36, %v761_v36 }
 0x19b   :  { %v3418_v57 = vpop.f32.mrf.mxu0  ;;  %v727_v23 = vrot.slane %v3408_v16, 1  ;;  %v3434_v30 = vsel %vm924_vm15, %v906_v31, %v922_v13  ;;  %v4140_v4 = vpack.c.b16 %v3373_v0, %v3371_v52 }
 0x19c   :  { %v818_v48 = vrot.slane %v3418_v57, 2  ;;  %v915_v27 = vrot.slane %v3418_v57, 3  ;;  %v719_v41 = vrot.slane %v3418_v57, 1  ;;  %v1012_v22 = vrot.slane %v3418_v57, 4 }
 0x19e   :  { %1494 = vrot.lane.b32.xlu1 %v1466_v47, %s2718_s4  ;;  %v932_v34 = vsel %vm924_vm15, %v899_v56, %v915_v27  ;;  %v948_v21 = vsel %vm924_vm15, %v915_v27, %v899_v56  ;;  %v835_v36 = vsel %vm827_vm0, %v802_v45, %v818_v48  ;;  %v851_v37 = vsel %vm827_vm0, %v818_v48, %v802_v45 }
 0x19f   :  { %1382 = vrot.lane.b32.xlu2 %v1354_v15, %s2715_s16  ;;  %v1029_v42 = vsel %vm1021_vm14, %v996_v10, %v1012_v22  ;;  %v1045_v47 = vsel %vm1021_vm14, %v1012_v22, %v996_v10  ;;  %v971_v28 = vpack.c.bf16 %v932_v34, %v932_v34  ;;  %v972_v19 = vpack.c.bf16 %v948_v21, %v948_v21 }
 0x1a0   :  { %v1068_v27 = vpack.c.bf16 %v1029_v42, %v1029_v42  ;;  %v1069_v56 = vpack.c.bf16 %v1045_v47, %v1045_v47  ;;  %v874_v14 = vpack.c.bf16 %v835_v36, %v835_v36  ;;  %v875_v61 = vpack.c.bf16 %v851_v37, %v851_v37 }
 0x1a1   :  { %v1436_v45 = vunpack.c.l.b16 %v971_v28  ;;  %v1437_v48 = vunpack.c.l.b16 %v972_v19  ;;  %v738_v43 = vsel %vm730_vm1, %v703_v9, %v719_v41  ;;  %v754_v32 = vsel %vm730_vm1, %v719_v41, %v703_v9 }
 0x1a2   :  { %1272 = vrot.lane.b32.xlu0 %v1243_v7, %s2719_s0  ;;  %v1548_v15 = vunpack.c.l.b16 %v1068_v27  ;;  %v1549_v10 = vunpack.c.l.b16 %v1069_v56  ;;  %v1324_v22 = vunpack.c.l.b16 %v874_v14  ;;  %v1325_v34 = vunpack.c.l.b16 %v875_v61 }
 0x1a3   :  { %v3457_v21 = vpop.f32.mrf.mxu0  ;;  %v777_v42 = vpack.c.bf16 %v738_v43, %v738_v43  ;;  %v778_v36 = vpack.c.bf16 %v754_v32, %v754_v32  ;;  %v746_v28 = vsel %vm730_vm1, %v711_v17, %v727_v23  ;;  %v762_v19 = vsel %vm730_vm1, %v727_v23, %v711_v17 }
 0x1a4   :  { %v3464_v47 = vunpack.c.l.b16 %v791_v60  ;;  %v3466_v41 = vunpack.c.l.b16 %v792_v55  ;;  %v955_v14 = vsel %vm924_vm15, %v922_v13, %v906_v31  ;;  %v1573_v7 = vpack.c.b16 %v1549_v10, %v1548_v15 }
 0x1a5   :  { %v1461_v61 = vpack.c.b16 %v1437_v48, %v1436_v45  ;;  %v1349_v9 = vpack.c.b16 %v1325_v34, %v1324_v22  ;;  %v985_v27 = vpack.c.bf16 %v3434_v30, %v3434_v30  ;;  %v1212_v56 = vunpack.c.l.b16 %v777_v42 }
 0x1a6   :  { %v1213_v43 = vunpack.c.l.b16 %v778_v36  ;;  %v793_v17 = vpack.c.bf16 %v746_v28, %v746_v28  ;;  %v794_v23 = vpack.c.bf16 %v762_v19, %v762_v19  ;;  %v907_v60 = vrot.slane %v3360_v24, 3 }
 0x1a7   :  { %2487 = vmatmul.msk.bf16.gmra.mxu2 %vm1582_vm2, %v1573_v7  ;;  %1372 = vrot.lane.b32.xlu1 %v1349_v9, %s2715_s16  ;;  %v986_v55 = vpack.c.bf16 %v955_v14, %v955_v14  ;;  %v842_v31 = vsel %vm827_vm0, %v809_v29, %v825_v40  ;;  %v858_v13 = vsel %vm827_vm0, %v825_v40, %v809_v29  ;;  %v1471_v45 = vpop.permute.xlu1 %1470  ;;  %v826_v32 = vrot.slane %v3408_v16, 2 }
 0x1a8   :  { %v1237_v30 = vpack.c.b16 %v1213_v43, %v1212_v56  ;;  %v1244_v48 = vpack.c.b16 %v3466_v41, %v3464_v47  ;;  %v923_v15 = vrot.slane %v3408_v16, 3  ;;  %v704_v10 = vrot.slane %v3457_v21, 1 }
 0x1a9   :  { %v803_v22 = vrot.slane %v3457_v21, 2  ;;  %v1359_v34 = vpop.permute.xlu0 %1358  ;;  %v888_v42 = vpack.c.bf16 %v842_v31, %v842_v31  ;;  %v889_v36 = vpack.c.bf16 %v858_v13, %v858_v13  ;;  %v900_v28 = vrot.slane %v3457_v21, 3 }
 0x1aa   :  { %v997_v29 = vrot.slane %v3457_v21, 4  ;;  %1484 = vrot.lane.b32.xlu0 %v1461_v61, %s2718_s4  ;;  %1260 = vrot.lane.b32.xlu2 %v1237_v30, %s2719_s0  ;;  %v1633_v40 = vsel %vm1631_vm5, %v3414_v54, %v1359_v34  ;;  %v3501_v19 = vunpack.c.l.b16 %v793_v17  ;;  %v3506_v14 = vunpack.c.l.b16 %v794_v23 }
 0x1ab   :  { %v1666_v47 = vsel %vm1664_vm6, %v1633_v40, %v1471_v45  ;;  %v3504_v41 = vpop.f32.mrf.mxu0  ;;  %v3508_v7 = vunpack.c.l.b16 %v985_v27  ;;  %v3510_v9 = vunpack.c.l.b16 %v986_v55  ;;  %v3516_v54 = vsel %vm924_vm15, %v907_v60, %v923_v15 }
 0x1ac   :  { %1853 = vmatmul.bf16.vlgmr.msra.gmra.mxu1 %v1666_v47  ;;  %v819_v61 = vrot.slane %v3504_v41, 2  ;;  %v916_v56 = vrot.slane %v3504_v41, 3  ;;  %v3520_v43 = vsel %vm924_vm15, %v923_v15, %v907_v60  ;;  %v720_v17 = vrot.slane %v3504_v41, 1 }
 0x1ad   :  { %v1013_v27 = vrot.slane %v3504_v41, 4  ;;  %v3524_v23 = vunpack.c.l.b16 %v888_v42  ;;  %v3526_v55 = vunpack.c.l.b16 %v889_v36  ;;  %v1245_v0 = vpack.c.b16 %v3506_v14, %v3501_v19 }
 0x1ae   :  { %v933_v31 = vsel %vm924_vm15, %v900_v28, %v916_v56  ;;  %v949_v13 = vsel %vm924_vm15, %v916_v56, %v900_v28  ;;  %v836_v30 = vsel %vm827_vm0, %v803_v22, %v819_v61  ;;  %v852_v60 = vsel %vm827_vm0, %v819_v61, %v803_v22  ;;  %v1249_v56 = vpop.permute.xlu2 %1248 }
 0x1af   :  { %1496 = vrot.lane.b32.xlu1 %v1467_v11, %s2718_s4  ;;  %v1030_v45 = vsel %vm1021_vm14, %v997_v29, %v1013_v27  ;;  %v1046_v15 = vsel %vm1021_vm14, %v1013_v27, %v997_v29  ;;  %v973_v34 = vpack.c.bf16 %v933_v31, %v933_v31  ;;  %v974_v42 = vpack.c.bf16 %v949_v13, %v949_v13 }
 0x1b0   :  { %v1070_v36 = vpack.c.bf16 %v1030_v45, %v1030_v45  ;;  %v1071_v28 = vpack.c.bf16 %v1046_v15, %v1046_v15  ;;  %v876_v40 = vpack.c.bf16 %v836_v30, %v836_v30  ;;  %v877_v47 = vpack.c.bf16 %v852_v60, %v852_v60 }
 0x1b1   :  { %v1438_v37 = vunpack.c.l.b16 %v973_v34  ;;  %v1439_v22 = vunpack.c.l.b16 %v974_v42  ;;  %v739_v61 = vsel %vm730_vm1, %v704_v10, %v720_v17  ;;  %v755_v12 = vsel %vm730_vm1, %v720_v17, %v704_v10 }
 0x1b2   :  { %1274 = vrot.lane.b32.xlu0 %v1244_v48, %s2719_s0  ;;  %1384 = vrot.lane.b32.xlu2 %v4140_v4, %s2715_s16  ;;  %v1550_v11 = vunpack.c.l.b16 %v1070_v36  ;;  %v1551_v29 = vunpack.c.l.b16 %v1071_v28  ;;  %v1326_v27 = vunpack.c.l.b16 %v876_v40  ;;  %v1327_v31 = vunpack.c.l.b16 %v877_v47 }
 0x1b3   :  { %v678_v13 = vpack.c.bf16 %v3363_v50, %v3363_v50  ;;  %v3557_v60 = vpop.f32.mrf.mxu0  ;;  %v779_v10 = vpack.c.bf16 %v739_v61, %v739_v61  ;;  %v780_v17 = vpack.c.bf16 %v755_v12, %v755_v12  ;;  %v4141_v48 = vpack.c.b16 %v2995_v5, %v3003_v8 }
 0x1b4   :  { %v1468_v45 = vpack.c.b16 %v3510_v9, %v3508_v7  ;;  %v4142_v15 = vrot.slane %v3360_v24, 2  ;;  %v1574_v42 = vpack.c.b16 %v1551_v29, %v1550_v11  ;;  %v1350_v36 = vpack.c.b16 %v1327_v31, %v1326_v27 }
 0x1b5   :  { %v1588_v52 = vsel %vm1582_vm2, %v4141_v48, %v1249_v56  ;;  %v987_v5 = vpack.c.bf16 %v3516_v54, %v3516_v54  ;;  %v1462_v28 = vpack.c.b16 %v1439_v22, %v1438_v37  ;;  %v1214_v40 = vunpack.c.l.b16 %v779_v10 }
 0x1b6   :  { %v3573_v34 = vsel %vm827_vm0, %v4142_v15, %v826_v32  ;;  %v1215_v47 = vunpack.c.l.b16 %v780_v17  ;;  %v1356_v7 = vpack.c.b16 %v3526_v55, %v3524_v23  ;;  %v705_v9 = vrot.slane %v3557_v60, 1 }
 0x1b7   :  { %2488 = vmatmul.msk.bf16.gmra.mxu2 %vm1582_vm2, %v1574_v42  ;;  %1374 = vrot.lane.b32.xlu1 %v1350_v36, %s2715_s16  ;;  %v4143_v56 = vpack.c.bf16 %v3320_v62, %v3320_v62  ;;  %v4144_v12 = vpack.c.bf16 %v3175_v18, %v3175_v18  ;;  %v4145_v22 = vpack.c.bf16 %v3295_v51, %v3295_v51  ;;  %v804_v55 = vrot.slane %v3557_v60, 2  ;;  %v1473_v11 = vpop.permute.xlu1 %1472 }
 0x1b8   :  { %v1238_v4 = vpack.c.b16 %v1215_v47, %v1214_v40  ;;  %v4146_v29 = vpack.c.bf16 %v3036_v2, %v3036_v2  ;;  %v4147_v27 = vpack.c.bf16 %v3066_v38, %v3066_v38  ;;  %v4148_v10 = vmov %v4142_v15 }
 0x1b9   :  { %v3587_v61 = vunpack.c.l.b16 %v4143_v56  ;;  %v3592_v37 = vunpack.c.l.b16 %v4144_v12  ;;  %v3597_v23 = vunpack.c.l.b16 %v4145_v22  ;;  %v1361_v31 = vpop.permute.xlu0 %1360  ;;  %v3616_v51 = vsel %vm827_vm0, %v826_v32, %v4148_v10  ;;  %v3632_v36 = vpop.f32.mrf.mxu2 }
 0x1ba   :  { %v3603_v62 = vunpack.c.l.b16 %v4146_v29  ;;  %v3608_v18 = vunpack.c.l.b16 %v4147_v27  ;;  %v4149_v48 = vrot.slane %v3157_v33, 4  ;;  %v4150_v38 = vrot.slane %v3115_v26, 4  ;;  %1486 = vrot.lane.b32.xlu0 %v1462_v28, %s2718_s4  ;;  %1262 = vrot.lane.b32.xlu2 %v1238_v4, %s2719_s0 }
 0x1bb   :  { %v901_v42 = vrot.slane %v3557_v60, 3  ;;  %v1635_v32 = vsel %vm1631_vm5, %v1588_v52, %v1361_v31  ;;  %v998_v22 = vrot.slane %v3557_v60, 4  ;;  %v3644_v29 = vpop.f32.mrf.mxu0  ;;  %v890_v10 = vpack.c.bf16 %v3573_v34, %v3573_v34 }
 0x1bc   :  { %v1035_v15 = vsel %vm1021_vm14, %v4150_v38, %v4149_v48  ;;  %v4151_v47 = vmov %v4150_v38  ;;  %v4152_v56 = vmov %v4149_v48  ;;  %v1669_v28 = vsel %vm1664_vm6, %v1635_v32, %v1473_v11 }
 0x1bd   :  { %v1051_v12 = vsel %vm1021_vm14, %v4152_v56, %v4151_v47  ;;  %v1080_v4 = vpack.c.bf16 %v1035_v15, %v1035_v15  ;;  %1858 = vmatmul.bf16.gmra.mxu1 %v1669_v28  ;;  %v820_v27 = vrot.slane %v3644_v29, 2  ;;  %v917_v31 = vrot.slane %v3644_v29, 3 }
 0x1be   :  { %v1081_v52 = vpack.c.bf16 %v1051_v12, %v1051_v12  ;;  %v891_v48 = vpack.c.bf16 %v3616_v51, %v3616_v51  ;;  %v721_v38 = vrot.slane %v3644_v29, 1  ;;  %v1014_v47 = vrot.slane %v3644_v29, 4 }
 0x1bf   :  { %v3654_v11 = vunpack.c.l.b16 %v1080_v4  ;;  %v934_v15 = vsel %vm924_vm15, %v901_v42, %v917_v31  ;;  %v950_v56 = vsel %vm924_vm15, %v917_v31, %v901_v42  ;;  %v837_v34 = vsel %vm827_vm0, %v804_v55, %v820_v27  ;;  %1498 = vrot.lane.b32.xlu1 %v1468_v45, %s2718_s4 }
 0x1c0   :  { %v3656_v32 = vunpack.c.l.b16 %v1081_v52  ;;  %v853_v51 = vsel %vm827_vm0, %v820_v27, %v804_v55  ;;  %v1031_v12 = vsel %vm1021_vm14, %v998_v22, %v1014_v47  ;;  %v1047_v28 = vsel %vm1021_vm14, %v1014_v47, %v998_v22 }
 0x1c1   :  { %v975_v4 = vpack.c.bf16 %v934_v15, %v934_v15  ;;  %v976_v52 = vpack.c.bf16 %v950_v56, %v950_v56  ;;  %v1072_v40 = vpack.c.bf16 %v1031_v12, %v1031_v12  ;;  %v1073_v17 = vpack.c.bf16 %v1047_v28, %v1047_v28  ;;  %v3680_v55 = vpop.f32.mrf.mxu2  ;;  %v1251_v12 = vpop.permute.xlu2 %1250 }
 0x1c2   :  { %v878_v2 = vpack.c.bf16 %v837_v34, %v837_v34  ;;  %v879_v42 = vpack.c.bf16 %v853_v51, %v853_v51  ;;  %v740_v30 = vsel %vm730_vm1, %v705_v9, %v721_v38  ;;  %v756_v45 = vsel %vm730_vm1, %v721_v38, %v705_v9  ;;  %1276 = vrot.lane.b32.xlu0 %v1245_v0, %s2719_s0 }
 0x1c3   :  { %v1440_v31 = vunpack.c.l.b16 %v975_v4  ;;  %v1441_v8 = vunpack.c.l.b16 %v976_v52  ;;  %1386 = vrot.lane.b32.xlu2 %v1356_v7, %s2715_s16  ;;  %v1552_v22 = vunpack.c.l.b16 %v1072_v40  ;;  %v1553_v27 = vunpack.c.l.b16 %v1073_v17  ;;  %v3682_v56 = vpop.f32.mrf.mxu0 }
 0x1c4   :  { %v1328_v47 = vunpack.c.l.b16 %v878_v2  ;;  %v1329_v15 = vunpack.c.l.b16 %v879_v42  ;;  %v781_v34 = vpack.c.bf16 %v740_v30, %v740_v30  ;;  %v782_v51 = vpack.c.bf16 %v756_v45, %v756_v45 }
 0x1c5   :  { %v4153_v9 = vpack.c.bf16 %v3115_v26, %v3115_v26  ;;  %v4154_v19 = vpack.c.bf16 %v3157_v33, %v3157_v33  ;;  %v693_v0 = vpack.c.bf16 %v3298_v20, %v3298_v20  ;;  %v1082_v7 = vpack.c.bf16 %v3333_v46, %v3333_v46 }
 0x1c6   :  { %v1083_v30 = vpack.c.bf16 %v3337_v63, %v3337_v63  ;;  %v1452_v26 = vunpack.c.l.b16 %v987_v5  ;;  %v1575_v17 = vpack.c.b16 %v1553_v27, %v1552_v22  ;;  %v1463_v2 = vpack.c.b16 %v1441_v8, %v1440_v31 }
 0x1c7   :  { %v3687_v38 = vunpack.c.l.b16 %v4153_v9  ;;  %v3692_v14 = vunpack.c.l.b16 %v4154_v19  ;;  %v1351_v40 = vpack.c.b16 %v1329_v15, %v1328_v47  ;;  %v3706_v33 = vunpack.c.l.b16 %v678_v13 }
 0x1c8   :  { %v1216_v20 = vunpack.c.l.b16 %v781_v34  ;;  %v1217_v28 = vunpack.c.l.b16 %v782_v51  ;;  %v4155_v46 = vpack.c.bf16 %v3418_v57, %v3418_v57  ;;  %v1579_v63 = vpack.c.b16 %v3656_v32, %v3654_v11  ;;  %2489 = vmatmul.msk.bf16.gmra.mxu2 %vm1582_vm2, %v1575_v17  ;;  %v1475_v57 = vpop.permute.xlu1 %1474 }
 0x1c9   :  { %1376 = vrot.lane.b32.xlu1 %v1351_v40, %s2715_s16  ;;  %v4156_v50 = vpack.c.bf16 %v3520_v43, %v3520_v43  ;;  %v1340_v13 = vunpack.c.l.b16 %v890_v10  ;;  %v1341_v5 = vunpack.c.l.b16 %v891_v48  ;;  %v1163_v8 = vpack.c.b16 %v3692_v14, %v3687_v38  ;;  %v1363_v47 = vpop.permute.xlu0 %1362  ;;  %v3744_v51 = vpop.f32.mrf.mxu2 }
 0x1ca   :  { %v3711_v4 = vunpack.c.l.b16 %v4155_v46  ;;  %v1239_v52 = vpack.c.b16 %v1217_v28, %v1216_v20  ;;  %v4157_v31 = vpack.c.bf16 %v3239_v53, %v3239_v53  ;;  %v3729_v22 = vunpack.c.l.b16 %v693_v0  ;;  %1488 = vrot.lane.b32.xlu0 %v1463_v2, %s2718_s4 }
 0x1cb   :  { %v1453_v54 = vunpack.c.l.b16 %v4156_v50  ;;  %v3731_v27 = vunpack.c.l.b16 %v1082_v7  ;;  %v3733_v43 = vunpack.c.l.b16 %v1083_v30  ;;  %v4158_v10 = vpack.c.b16 %v3040_v3, %v3042_v6  ;;  %v3750_v19 = vpop.f32.mrf.mxu0 }
 0x1cc   :  { %v1157_v42 = vpack.c.b16 %v3711_v4, %v3706_v33  ;;  %v3727_v45 = vunpack.c.l.b16 %v4157_v31  ;;  %v805_v15 = vrot.slane %v3682_v56, 2  ;;  %v902_v34 = vrot.slane %v3682_v56, 3  ;;  %1264 = vrot.lane.b32.xlu2 %v1239_v52, %s2719_s0 }
 0x1cd   :  { %v1591_v48 = vsel %vm1582_vm2, %v4158_v10, %v1251_v12  ;;  %v999_v3 = vrot.slane %v3682_v56, 4  ;;  %v821_v0 = vrot.slane %v3750_v19, 2  ;;  %v918_v7 = vrot.slane %v3750_v19, 3 }
 0x1ce   :  { %v1637_v53 = vsel %vm1631_vm5, %v1591_v48, %v1363_v47  ;;  %v1469_v30 = vpack.c.b16 %v1453_v54, %v1452_v26  ;;  %v1357_v17 = vpack.c.b16 %v1341_v5, %v1340_v13  ;;  %v706_v2 = vrot.slane %v3682_v56, 1 }
 0x1cf   :  { %v1672_v6 = vsel %vm1664_vm6, %v1637_v53, %v1475_v57  ;;  %v722_v40 = vrot.slane %v3750_v19, 1  ;;  %v1015_v12 = vrot.slane %v3750_v19, 4  ;;  %v935_v28 = vsel %vm924_vm15, %v902_v34, %v918_v7 }
 0x1d0   :  { %1863 = vmatmul.bf16.gmra.mxu1 %v1672_v6  ;;  %v951_v46 = vsel %vm924_vm15, %v918_v7, %v902_v34  ;;  %v838_v50 = vsel %vm827_vm0, %v805_v15, %v821_v0  ;;  %v854_v26 = vsel %vm827_vm0, %v821_v0, %v805_v15  ;;  %v977_v5 = vpack.c.bf16 %v935_v28, %v935_v28 }
 0x1d1   :  { %1500 = vrot.lane.b32.xlu1 %v1469_v30, %s2718_s4  ;;  %v1032_v54 = vsel %vm1021_vm14, %v999_v3, %v1015_v12  ;;  %v1048_v13 = vsel %vm1021_vm14, %v1015_v12, %v999_v3  ;;  %v978_v52 = vpack.c.bf16 %v951_v46, %v951_v46  ;;  %v880_v10 = vpack.c.bf16 %v838_v50, %v838_v50  ;;  %v3777_v6 = vpop.f32.mrf.mxu2 }
 0x1d2   :  { %v1074_v57 = vpack.c.bf16 %v1032_v54, %v1032_v54  ;;  %v1075_v31 = vpack.c.bf16 %v1048_v13, %v1048_v13  ;;  %v881_v48 = vpack.c.bf16 %v854_v26, %v854_v26  ;;  %v1442_v47 = vunpack.c.l.b16 %v977_v5  ;;  %v1253_v5 = vpop.permute.xlu2 %1252 }
 0x1d3   :  { %v1443_v34 = vunpack.c.l.b16 %v978_v52  ;;  %v741_v53 = vsel %vm730_vm1, %v706_v2, %v722_v40  ;;  %v757_v15 = vsel %vm730_vm1, %v722_v40, %v706_v2  ;;  %v1330_v7 = vunpack.c.l.b16 %v880_v10  ;;  %v3779_v12 = vpop.f32.mrf.mxu0 }
 0x1d4   :  { %1388 = vrot.lane.b32.xlu2 %v1357_v17, %s2715_s16  ;;  %v1554_v0 = vunpack.c.l.b16 %v1074_v57  ;;  %v1555_v3 = vunpack.c.l.b16 %v1075_v31  ;;  %v1331_v30 = vunpack.c.l.b16 %v881_v48  ;;  %v783_v46 = vpack.c.bf16 %v741_v53, %v741_v53 }
 0x1d5   :  { %v1464_v28 = vpack.c.b16 %v1443_v34, %v1442_v47  ;;  %v784_v50 = vpack.c.bf16 %v757_v15, %v757_v15  ;;  %v681_v13 = vpack.c.bf16 %v3504_v41, %v3504_v41  ;;  %v680_v17 = vpack.c.bf16 %v3457_v21, %v3457_v21 }
 0x1d6   :  { %v1576_v26 = vpack.c.b16 %v1555_v3, %v1554_v0  ;;  %v1352_v54 = vpack.c.b16 %v1331_v30, %v1330_v7  ;;  %v1218_v2 = vunpack.c.l.b16 %v783_v46  ;;  %v4159_v31 = vpack.c.b16 %v3080_v59, %v3078_v58 }
 0x1d7   :  { %v1219_v40 = vunpack.c.l.b16 %v784_v50  ;;  %v1477_v57 = vpop.permute.xlu1 %1476  ;;  %v3796_v21 = vunpack.c.l.b16 %v681_v13  ;;  %v3801_v15 = vunpack.c.l.b16 %v680_v17  ;;  %v806_v0 = vrot.slane %v3779_v12, 2 }
 0x1d8   :  { %2490 = vmatmul.msk.bf16.gmra.mxu2 %vm1582_vm2, %v1576_v26  ;;  %1378 = vrot.lane.b32.xlu0 %v1352_v54, %s2715_s16  ;;  %v1594_v10 = vsel %vm1582_vm2, %v4159_v31, %v1253_v5  ;;  %v1365_v41 = vpop.permute.xlu0 %1364  ;;  %v903_v58 = vrot.slane %v3779_v12, 3  ;;  %v1000_v7 = vrot.slane %v3779_v12, 4  ;;  %v707_v50 = vrot.slane %v3779_v12, 1 }
 0x1d9   :  { %1490 = vrot.lane.b32.xlu1 %v1464_v28, %s2718_s4  ;;  %v1240_v52 = vpack.c.b16 %v1219_v40, %v1218_v2  ;;  %v1639_v48 = vsel %vm1631_vm5, %v1594_v10, %v1365_v41  ;;  %v3794_v47 = vpop.f32.mrf.mxu2  ;;  %v4164_v11 = vpack.c.b16 %v3608_v18, %v3603_v62  ;;  %v4165_v38 = vpack.c.b16 %v3796_v21, %v3801_v15 }
 0x1da   :  { %v1675_v34 = vsel %vm1664_vm6, %v1639_v48, %v1477_v57 }
 0x1db   :  { %v3799_v53 = vpop.f32.mrf.mxu0 }
 0x1dc   :  { %1266 = vrot.lane.b32.xlu2 %v1240_v52, %s2719_s0  ;;  %v822_v59 = vrot.slane %v3799_v53, 2  ;;  %v919_v3 = vrot.slane %v3799_v53, 3  ;;  %v723_v30 = vrot.slane %v3799_v53, 1  ;;  %v1016_v28 = vrot.slane %v3799_v53, 4 }
 0x1de   :  { %v936_v26 = vsel %vm924_vm15, %v903_v58, %v919_v3  ;;  %v952_v54 = vsel %vm924_vm15, %v919_v3, %v903_v58  ;;  %v839_v13 = vsel %vm827_vm0, %v806_v0, %v822_v59  ;;  %v1033_v5 = vsel %vm1021_vm14, %v1000_v7, %v1016_v28 }
 0x1df   :  { %v1049_v2 = vsel %vm1021_vm14, %v1016_v28, %v1000_v7  ;;  %v979_v40 = vpack.c.bf16 %v936_v26, %v936_v26  ;;  %v980_v17 = vpack.c.bf16 %v952_v54, %v952_v54  ;;  %v1076_v52 = vpack.c.bf16 %v1033_v5, %v1033_v5 }
 0x1e0   :  { %1868 = vmatmul.bf16.gmra.mxu1 %v1675_v34  ;;  %v1077_v57 = vpack.c.bf16 %v1049_v2, %v1049_v2  ;;  %v855_v31 = vsel %vm827_vm0, %v822_v59, %v806_v0  ;;  %v882_v10 = vpack.c.bf16 %v839_v13, %v839_v13  ;;  %v742_v58 = vsel %vm730_vm1, %v707_v50, %v723_v30 }
 0x1e1   :  { %v1444_v41 = vunpack.c.l.b16 %v979_v40  ;;  %v1445_v48 = vunpack.c.l.b16 %v980_v17  ;;  %v883_v34 = vpack.c.bf16 %v855_v31, %v855_v31  ;;  %v3827_v3 = vpop.f32.mrf.mxu2  ;;  %v1556_v20 = vunpack.c.l.b16 %v1076_v52  ;;  %v1255_v52 = vpop.permute.xlu2 %1254 }
 0x1e2   :  { %v1557_v9 = vunpack.c.l.b16 %v1077_v57  ;;  %v1332_v46 = vunpack.c.l.b16 %v882_v10  ;;  %v758_v7 = vsel %vm730_vm1, %v723_v30, %v707_v50  ;;  %v785_v54 = vpack.c.bf16 %v742_v58, %v742_v58 }
 0x1e3   :  { %v1465_v28 = vpack.c.b16 %v1445_v48, %v1444_v41  ;;  %v1333_v26 = vunpack.c.l.b16 %v883_v34  ;;  %v786_v5 = vpack.c.bf16 %v758_v7, %v758_v7  ;;  %v682_v40 = vpack.c.bf16 %v3557_v60, %v3557_v60 }
 0x1e4   :  { %v1577_v0 = vpack.c.b16 %v1557_v9, %v1556_v20  ;;  %v1220_v13 = vunpack.c.l.b16 %v785_v54  ;;  %v683_v17 = vpack.c.bf16 %v3644_v29, %v3644_v29  ;;  %v4160_v9 = vpack.c.b16 %v3167_v35, %v3184_v39 }
 0x1e5   :  { %1492 = vrot.lane.b32.xlu1 %v1465_v28, %s2718_s4  ;;  %v1353_v59 = vpack.c.b16 %v1333_v26, %v1332_v46  ;;  %v1221_v2 = vunpack.c.l.b16 %v786_v5  ;;  %v3846_v29 = vunpack.c.l.b16 %v682_v40  ;;  %v684_v48 = vpack.c.bf16 %v3682_v56, %v3682_v56 }
 0x1e6   :  { %v1597_v20 = vsel %vm1582_vm2, %v4160_v9, %v1255_v52  ;;  %v3848_v31 = vunpack.c.l.b16 %v683_v17  ;;  %v685_v34 = vpack.c.bf16 %v3750_v19, %v3750_v19  ;;  %v4161_v7 = vpack.c.b16 %v3597_v23, %v3592_v37 }
 0x1e7   :  { %1380 = vrot.lane.b32.xlu0 %v1353_v59, %s2715_s16  ;;  %v1241_v30 = vpack.c.b16 %v1221_v2, %v1220_v13  ;;  %v1479_v50 = vpop.permute.xlu1 %1478  ;;  %v4162_v26 = vpack.c.b16 %v3287_v49, %v3304_v25  ;;  %v687_v25 = vpack.c.bf16 %v3799_v53, %v3799_v53  ;;  %v686_v40 = vpack.c.bf16 %v3779_v12, %v3779_v12 }
 0x1e8   :  { %2491 = vmatmul.msk.bf16.gmra.mxu2 %vm1582_vm2, %v1577_v0  ;;  %v1159_v41 = vpack.c.b16 %v3848_v31, %v3846_v29  ;;  %v3867_v0 = vunpack.c.l.b16 %v684_v48  ;;  %v3872_v19 = vunpack.c.l.b16 %v685_v34 }
 0x1e9   :  { %1268 = vrot.lane.b32.xlu2 %v1241_v30, %s2719_s0  ;;  %v1367_v46 = vpop.permute.xlu0 %1366  ;;  %v3844_v57 = vpop.f32.mrf.mxu2  ;;  %v3887_v52 = vunpack.c.l.b16 %v687_v25  ;;  %v4163_v30 = vpack.c.b16 %v3587_v61, %v3391_v44 }
 0x1ea   :  { %v1641_v60 = vsel %vm1631_vm5, %v1597_v20, %v1367_v46  ;;  %v1257_v35 = vpop.permute.xlu2 %1256  ;;  %v1160_v37 = vpack.c.b16 %v3872_v19, %v3867_v0  ;;  %v3896_v46 = vunpack.c.l.b16 %v686_v40  ;;  %v1004_v19 = vrot.slane %v3360_v24, 4 }
 0x1eb   :  { %v1678_v10 = vsel %vm1664_vm6, %v1641_v60, %v1479_v50  ;;  %v1600_v54 = vsel %vm1582_vm2, %v4162_v26, %v1257_v35 }
 0x1ec   :  { %v1161_v12 = vpack.c.b16 %v3887_v52, %v3896_v46 }
 0x1f0   :  { %1873 = vmatmul.bf16.gmra.mxu1 %v1678_v10 }
 0x1f1   :  { %v3853_v39 = vpop.f32.mrf.mxu2 }
 0x1f2   :  { %v1259_v58 = vpop.permute.xlu2 %1258 }
 0x1f3   :  { %v1603_v50 = vsel %vm1582_vm2, %v4163_v30, %v1259_v58 }
 0x1f7   :  { %v1481_v28 = vpop.permute.xlu1 %1480 }
 0x1f8   :  { %2492 = vmatmul.msk.bf16.gmra.mxu2 %vm1582_vm2, %v4161_v7 }
 0x1f9   :  { %v1369_v5 = vpop.permute.xlu0 %1368  ;;  %v3870_v59 = vpop.f32.mrf.mxu2 }
 0x1fa   :  { %v1643_v56 = vsel %vm1631_vm5, %v1600_v54, %v1369_v5  ;;  %v1383_v23 = vpop.permute.xlu2 %1382 }
 0x1fb   :  { %v1681_v13 = vsel %vm1664_vm6, %v1643_v56, %v1481_v28 }
 0x200   :  { %1878 = vmatmul.bf16.gmra.mxu1 %v1681_v13 }
 0x201   :  { %v1271_v2 = vpop.permute.xlu0 %1270  ;;  %v3877_v49 = vpop.f32.mrf.mxu2 }
 0x202   :  { %v1621_v32 = vsel %vm1582_vm2, %v4164_v11, %v1271_v2  ;;  %v3928_v2 = vld [vmem:[%s4135_s3] ss:$0 sm:$0xff] }
 0x203   :  { %v1657_v60 = vsel %vm1631_vm5, %v1621_v32, %v1383_v23 }
 0x204   :  { %v1261_v9 = vpop.permute.xlu2 %1260 }
 0x205   :  { %v1606_v62 = vsel %vm1582_vm2, %v1157_v42, %v1261_v9  ;;  %v4166_v9 = vpack.c.b16 %v3729_v22, %v3727_v45  ;;  %v694_v45 = vpack.c.bf16 %v3360_v24, %v3360_v24  ;;  %v695_v22 = vpack.c.bf16 %v3408_v16, %v3408_v16 }
 0x208   :  { %2493 = vmatmul.msk.bf16.gmra.mxu2 %vm1582_vm2, %v1579_v63  ;;  %v1371_v17 = vpop.permute.xlu1 %1370 }
 0x209   :  { %v1645_v20 = vsel %vm1631_vm5, %v1603_v50, %v1371_v17  ;;  %v3894_v53 = vpop.f32.mrf.mxu2 }
 0x20c   :  { %v1483_v63 = vpop.permute.xlu0 %1482  ;;  %v1385_v48 = vpop.permute.xlu2 %1384 }
 0x20d   :  { %v1684_v44 = vsel %vm1664_vm6, %v1645_v20, %v1483_v63 }
 0x210   :  { %1883 = vmatmul.bf16.gmra.mxu1 %v1684_v44  ;;  %v1495_v61 = vpop.permute.xlu1 %1494 }
 0x211   :  { %v1702_v10 = vsel %vm1664_vm6, %v1657_v60, %v1495_v61  ;;  %v3907_v35 = vpop.f32.mrf.mxu2 }
 0x212   :  { %1913 = vmatmul.bf16.vlgmr.msrb.gmra.mxu3 %v1702_v10 }
 0x214   :  { %v1273_v34 = vpop.permute.xlu0 %1272  ;;  %v1263_v54 = vpop.permute.xlu2 %1262 }
 0x215   :  { %v1624_v5 = vsel %vm1582_vm2, %v1163_v8, %v1273_v34  ;;  %v1609_v14 = vsel %vm1582_vm2, %v4165_v38, %v1263_v54  ;;  %v3952_v34 = vld [vmem:[#allocation5] sm:$0xff]  ;;  %v1149_v54 = vunpack.c.l.b16 %v695_v22 }
 0x216   :  { %v1659_v33 = vsel %vm1631_vm5, %v1624_v5, %v1385_v48 }
 0x219   :  { %v1373_v18 = vpop.permute.xlu1 %1372 }
 0x21a   :  { %v1647_v58 = vsel %vm1631_vm5, %v1606_v62, %v1373_v18  ;;  %v3914_v28 = vpop.f32.mrf.mxu2  ;;  %v3954_v62 = vld [vmem:[#allocation5 + $0x8] sm:$0xff] }
 0x21c   :  { %v1485_v7 = vpop.permute.xlu0 %1484 }
 0x21d   :  { %v1687_v26 = vsel %vm1664_vm6, %v1647_v58, %v1485_v7  ;;  %v1387_v23 = vpop.permute.xlu2 %1386 }
 0x220   :  { %1888 = vmatmul.bf16.gmra.mxu1 %v1687_v26  ;;  %v1148_v26 = vunpack.c.l.b16 %v694_v45 }
 0x221   :  { %v1497_v56 = vpop.permute.xlu1 %1496 }
 0x222   :  { %v1705_v4 = vsel %vm1664_vm6, %v1659_v33, %v1497_v56  ;;  %v3923_v13 = vpop.f32.mrf.mxu2 }
 0x223   :  { %1918 = vmatmul.bf16.gmra.mxu3 %v1705_v4 }
 0x224   :  { %v1275_v42 = vpop.permute.xlu0 %1274 }
 0x225   :  { %v1627_v20 = vsel %vm1582_vm2, %v4166_v9, %v1275_v42 }
 0x226   :  { %v1661_v63 = vsel %vm1631_vm5, %v1627_v20, %v1387_v23  ;;  %v1265_v60 = vpop.permute.xlu2 %1264  ;;  %v1165_v23 = vpack.c.b16 %v1149_v54, %v1148_v26 }
 0x227   :  { %v1612_v5 = vsel %vm1582_vm2, %v1159_v41, %v1265_v60 }
 0x229   :  { %v1375_v8 = vpop.permute.xlu1 %1374  ;;  %v1854_v25 = vpop.f32.mrf.mxu1 }
 0x22a   :  { %v1649_v40 = vsel %vm1631_vm5, %v1609_v14, %v1375_v8  ;;  %v1855_v17 = vadd.f32 %v3928_v2, %v1854_v25  ;;  %v3942_v21 = vpop.f32.mrf.mxu2 }
 0x22c   :  { %v1487_v30 = vpop.permute.xlu0 %1486  ;;  %v1944_v11 = vadd.f32 %v3632_v36, %v1855_v17 }
 0x22d   :  { %v1690_v50 = vsel %vm1664_vm6, %v1649_v40, %v1487_v30 }
 0x22e   :  { %v2023_v10 = vmax.f32 %v1944_v11, 0.0  ;;  %v1389_v8 = vpop.permute.xlu2 %1388 }
 0x230   :  { %1893 = vmatmul.bf16.gmra.mxu1 %v1690_v50  ;;  %v2057_v58 = vmul.f32 %v3952_v34, %v2023_v10 }
 0x231   :  { %v1499_v15 = vpop.permute.xlu1 %1498  ;;  %v1856_v32 = vpop.f32.mrf.mxu1 }
 0x232   :  { %v1857_v44 = vadd.f32 %v3928_v2, %v1856_v32  ;;  %v1708_v61 = vsel %vm1664_vm6, %v1661_v63, %v1499_v15  ;;  %v3962_v4 = vpop.f32.mrf.mxu2 }
 0x233   :  { %1923 = vmatmul.bf16.gmra.mxu3 %v1708_v61 }
 0x234   :  { %v1946_v36 = vadd.f32 %v3680_v55, %v1857_v44  ;;  %v1277_v48 = vpop.permute.xlu0 %1276 }
 0x235   :  { %v1630_v17 = vsel %vm1582_vm2, %v1165_v23, %v1277_v48 }
 0x236   :  { %v2024_v18 = vmax.f32 %v1946_v36, 0.0  ;;  %v1663_v30 = vsel %vm1631_vm5, %v1630_v17, %v1389_v8  ;;  %v1267_v61 = vpop.permute.xlu2 %1266 }
 0x237   :  { %v1615_v10 = vsel %vm1582_vm2, %v1160_v37, %v1267_v61  ;;  %v1020_v37 = vrot.slane %v3408_v16, 4 }
 0x238   :  { %v2058_v7 = vmul.f32 %v3954_v62, %v2024_v18 }
 0x23a   :  { %v1859_v33 = vpop.f32.mrf.mxu1  ;;  %v2089_v55 = vmax.f32 %v2057_v58, %v2058_v7  ;;  %v3972_v15 = vpop.f32.mrf.mxu2 }
 0x23b   :  { %v1377_v56 = vpop.permute.xlu1 %1376  ;;  %v1860_v38 = vadd.f32 %v3928_v2, %v1859_v33 }
 0x23c   :  { %v1651_v42 = vsel %vm1631_vm5, %v1612_v5, %v1377_v56  ;;  %v1489_v14 = vpop.permute.xlu0 %1488  ;;  %v2090_v40 = vrot.slane %v2089_v55, 4 }
 0x23d   :  { %v1693_v25 = vsel %vm1664_vm6, %v1651_v42, %v1489_v14  ;;  %v1949_v29 = vadd.f32 %v3744_v51, %v1860_v38  ;;  %v4167_v14 = vpack.c.b16 %v3733_v43, %v3731_v27 }
 0x23e   :  { %v2091_v50 = vmax.f32 %v2089_v55, %v2090_v40 }
 0x23f   :  { %v2025_v11 = vmax.f32 %v1949_v29, 0.0 }
 0x240   :  { %1898 = vmatmul.bf16.gmra.mxu1 %v1693_v25  ;;  %v2092_v63 = vrot.slane %v2091_v50, 2 }
 0x241   :  { %v2059_v51 = vmul.f32 %v3952_v34, %v2025_v11 }
 0x242   :  { %v1861_v41 = vpop.f32.mrf.mxu1  ;;  %v2093_v36 = vmax.f32 %v2091_v50, %v2092_v63  ;;  %v3984_v56 = vpop.f32.mrf.mxu2 }
 0x243   :  { %v1501_v31 = vpop.permute.xlu1 %1500  ;;  %v1862_v9 = vadd.f32 %v3928_v2, %v1861_v41  ;;  %v1269_v17 = vpop.permute.xlu2 %1268 }
 0x244   :  { %v1711_v20 = vsel %vm1664_vm6, %v1663_v30, %v1501_v31  ;;  %v2094_v54 = vrot.slane %v2093_v36, 1  ;;  %v1053_v31 = vsel %vm1021_vm14, %v1020_v37, %v1004_v19 }
 0x245   :  { %1928 = vmatmul.bf16.gmra.mxu3 %v1711_v20  ;;  %v1951_v32 = vadd.f32 %v3777_v6, %v1862_v9 }
 0x246   :  { %v2095_v42 = vmax.f32 %v2093_v36, %v2094_v54 }
 0x247   :  { %v2026_v44 = vmax.f32 %v1951_v32, 0.0  ;;  %v1085_v32 = vpack.c.bf16 %v1053_v31, %v1053_v31 }
 0x248   :  { %v2201_v24 = vpack.c.bf16 %v2095_v42, %v2095_v42 }
 0x249   :  { %v2060_v60 = vmul.f32 %v3954_v62, %v2026_v44  ;;  %v1565_v46 = vunpack.c.l.b16 %v1085_v32 }
 0x24a   :  { %v1379_v18 = vpop.permute.xlu0 %1378  ;;  %v2253_v1 = vunpack.c.l.b16 %v2201_v24 }
 0x24b   :  { %v1491_v45 = vpop.permute.xlu1 %1490  ;;  %v2096_v48 = vmax.f32 %v2059_v51, %v2060_v60  ;;  %v1653_v58 = vsel %vm1631_vm5, %v1615_v10, %v1379_v18  ;;  %v4000_v27 = vpop.f32.mrf.mxu2 }
 0x24c   :  { %v1696_v26 = vsel %vm1664_vm6, %v1653_v58, %v1491_v45 }
 0x24d   :  { %v1864_v22 = vpop.f32.mrf.mxu1  ;;  %v2097_v6 = vrot.slane %v2096_v48, 4 }
 0x24e   :  { %v1865_v7 = vadd.f32 %v3928_v2, %v1864_v22 }
 0x24f   :  { %v2098_v5 = vmax.f32 %v2096_v48, %v2097_v6 }
 0x250   :  { %1903 = vmatmul.bf16.gmra.mxu1 %v1696_v26  ;;  %v1954_v0 = vadd.f32 %v3794_v47, %v1865_v7  ;;  %v1037_v47 = vsel %vm1021_vm14, %v1004_v19, %v1020_v37 }
 0x251   :  { %v2099_v33 = vrot.slane %v2098_v5, 2  ;;  %v1084_v11 = vpack.c.bf16 %v1037_v47, %v1037_v47 }
 0x252   :  { %v2027_v25 = vmax.f32 %v1954_v0, 0.0 }
 0x253   :  { %v2100_v23 = vmax.f32 %v2098_v5, %v2099_v33  ;;  %v1564_v52 = vunpack.c.l.b16 %v1084_v11  ;;  %v4012_v6 = vpop.f32.mrf.mxu2 }
 0x254   :  { %v2061_v30 = vmul.f32 %v3952_v34, %v2027_v25 }
 0x255   :  { %v1866_v55 = vpop.f32.mrf.mxu1  ;;  %2494 = vmatmul.msk.bf16.vlgmr.msra.gmra.mxu3 %vm1582_vm2, %v4167_v14  ;;  %v2101_v8 = vrot.slane %v2100_v23, 1  ;;  %v1581_v18 = vpack.c.b16 %v1565_v46, %v1564_v52 }
 0x256   :  { %v1867_v38 = vadd.f32 %v3928_v2, %v1866_v55 }
 0x257   :  { %v2102_v16 = vmax.f32 %v2100_v23, %v2101_v8  ;;  %v1493_v50 = vpop.permute.xlu1 %1492 }
 0x258   :  { %v1956_v40 = vadd.f32 %v3827_v3, %v1867_v38  ;;  %v1618_v3 = vsel %vm1582_vm2, %v1161_v12, %v1269_v17 }
 0x259   :  { %v2202_v41 = vpack.c.bf16 %v2102_v16, %v2102_v16  ;;  %v1381_v20 = vpop.permute.xlu0 %1380 }
 0x25a   :  { %v2028_v29 = vmax.f32 %v1956_v40, 0.0  ;;  %v1655_v61 = vsel %vm1631_vm5, %v1618_v3, %v1381_v20 }
 0x25b   :  { %v2254_v63 = vunpack.c.l.b16 %v2202_v41  ;;  %v1699_v51 = vsel %vm1664_vm6, %v1655_v61, %v1493_v50  ;;  %v4022_v14 = vpop.f32.mrf.mxu2 }
 0x25c   :  { %v2062_v43 = vmul.f32 %v3954_v62, %v2028_v29 }
 0x25d   :  { %v1869_v9 = vpop.f32.mrf.mxu1  ;;  %v2270_v60 = vsel %vm2269_vm7, %v2254_v63, %v2253_v1 }
 0x25e   :  { %v2103_v44 = vmax.f32 %v2061_v30, %v2062_v43  ;;  %v1870_v22 = vadd.f32 %v3928_v2, %v1869_v9 }
 0x260   :  { %v2104_v45 = vrot.slane %v2103_v44, 4  ;;  %1908 = vmatmul.bf16.gmra.mxu1 %v1699_v51  ;;  %v1959_v36 = vadd.f32 %v3844_v57, %v1870_v22 }
 0x262   :  { %v2105_v12 = vmax.f32 %v2103_v44, %v2104_v45  ;;  %v2029_v54 = vmax.f32 %v1959_v36, 0.0 }
 0x263   :  { %v4028_v17 = vpop.f32.mrf.mxu2 }
 0x264   :  { %v2106_v10 = vrot.slane %v2105_v12, 2  ;;  %v2063_v37 = vmul.f32 %v3952_v34, %v2029_v54 }
 0x265   :  { %v1871_v48 = vpop.f32.mrf.mxu1  ;;  %2495 = vmatmul.msk.bf16.gmra.mxu3 %vm1582_vm2, %v1581_v18 }
 0x266   :  { %v2107_v58 = vmax.f32 %v2105_v12, %v2106_v10  ;;  %v1872_v7 = vadd.f32 %v3928_v2, %v1871_v48 }
 0x268   :  { %v2108_v26 = vrot.slane %v2107_v58, 1  ;;  %v1961_v5 = vadd.f32 %v3853_v39, %v1872_v7 }
 0x26a   :  { %v2109_v33 = vmax.f32 %v2107_v58, %v2108_v26  ;;  %v2030_v0 = vmax.f32 %v1961_v5, 0.0 }
 0x26b   :  { %v4033_v50 = vpop.f32.mrf.mxu2 }
 0x26c   :  { %v2203_v19 = vpack.c.bf16 %v2109_v33, %v2109_v33  ;;  %v2064_v57 = vmul.f32 %v3954_v62, %v2030_v0 }
 0x26d   :  { %v1874_v55 = vpop.f32.mrf.mxu1 }
 0x26e   :  { %v2255_v42 = vunpack.c.l.b16 %v2203_v19  ;;  %v2110_v23 = vmax.f32 %v2063_v37, %v2064_v57  ;;  %v1875_v8 = vadd.f32 %v3928_v2, %v1874_v55 }
 0x270   :  { %v4020_v38 = vsel %vm2271_vm8, %v2255_v42, %v2270_v60  ;;  %v1964_v39 = vadd.f32 %v3870_v59, %v1875_v8  ;;  %v2111_v11 = vrot.slane %v2110_v23, 4 }
 0x272   :  { %v2031_v47 = vmax.f32 %v1964_v39, 0.0  ;;  %v2112_v44 = vmax.f32 %v2110_v23, %v2111_v11 }
 0x273   :  { %v4040_v61 = vpop.f32.mrf.mxu2 }
 0x274   :  { %v2065_v29 = vmul.f32 %v3952_v34, %v2031_v47  ;;  %v2113_v45 = vrot.slane %v2112_v44, 2 }
 0x275   :  { %v1876_v25 = vpop.f32.mrf.mxu1 }
 0x276   :  { %v1877_v40 = vadd.f32 %v3928_v2, %v1876_v25  ;;  %v2114_v22 = vmax.f32 %v2112_v44, %v2113_v45 }
 0x278   :  { %v1966_v24 = vadd.f32 %v3877_v49, %v1877_v40  ;;  %v2115_v48 = vrot.slane %v2114_v22, 1 }
 0x27a   :  { %v2032_v16 = vmax.f32 %v1966_v24, 0.0  ;;  %v2116_v5 = vmax.f32 %v2114_v22, %v2115_v48 }
 0x27b   :  { %v2003_v12 = vpop.f32.mrf.mxu2 }
 0x27c   :  { %v2066_v31 = vmul.f32 %v3954_v62, %v2032_v16  ;;  %v2204_v23 = vpack.c.bf16 %v2116_v5, %v2116_v5 }
 0x27d   :  { %v1879_v41 = vpop.f32.mrf.mxu1 }
 0x27e   :  { %v2117_v30 = vmax.f32 %v2065_v29, %v2066_v31  ;;  %v1880_v43 = vadd.f32 %v3928_v2, %v1879_v41  ;;  %v2256_v24 = vunpack.c.l.b16 %v2204_v23 }
 0x280   :  { %v1969_v59 = vadd.f32 %v3894_v53, %v1880_v43  ;;  %v2118_v36 = vrot.slane %v2117_v30, 4  ;;  %v2274_v11 = vsel %vm2273_vm9, %v2256_v24, %v4020_v38 }
 0x282   :  { %v2033_v20 = vmax.f32 %v1969_v59, 0.0  ;;  %v2119_v54 = vmax.f32 %v2117_v30, %v2118_v36 }
 0x283   :  { %v2005_v8 = vpop.f32.mrf.mxu2 }
 0x284   :  { %v2067_v1 = vmul.f32 %v3952_v34, %v2033_v20  ;;  %v2120_v55 = vrot.slane %v2119_v54, 2 }
 0x285   :  { %v1881_v3 = vpop.f32.mrf.mxu1 }
 0x286   :  { %v1882_v9 = vadd.f32 %v3928_v2, %v1881_v3  ;;  %v2121_v40 = vmax.f32 %v2119_v54, %v2120_v55 }
 0x288   :  { %v1971_v49 = vadd.f32 %v3907_v35, %v1882_v9  ;;  %v2122_v43 = vrot.slane %v2121_v40, 1 }
 0x28a   :  { %v2034_v32 = vmax.f32 %v1971_v49, 0.0 }
 0x28c   :  { %v2068_v63 = vmul.f32 %v3954_v62, %v2034_v32  ;;  %v2123_v32 = vmax.f32 %v2121_v40, %v2122_v43 }
 0x28d   :  { %v1884_v60 = vpop.f32.mrf.mxu1 }
 0x28e   :  { %v2124_v51 = vmax.f32 %v2067_v1, %v2068_v63  ;;  %v1885_v53 = vadd.f32 %v3928_v2, %v1884_v60 }
 0x290   :  { %v1974_v52 = vadd.f32 %v3914_v28, %v1885_v53  ;;  %v2125_v3 = vrot.slane %v2124_v51, 4  ;;  %v2205_v53 = vpack.c.bf16 %v2123_v32, %v2123_v32 }
 0x292   :  { %v2035_v18 = vmax.f32 %v1974_v52, 0.0  ;;  %v2126_v1 = vmax.f32 %v2124_v51, %v2125_v3 }
 0x294   :  { %v2069_v33 = vmul.f32 %v3952_v34, %v2035_v18  ;;  %v2127_v22 = vrot.slane %v2126_v1, 2 }
 0x295   :  { %v1886_v46 = vpop.f32.mrf.mxu1  ;;  %v1914_v10 = vpop.f32.mrf.mxu3 }
 0x296   :  { %v1887_v35 = vadd.f32 %v3928_v2, %v1886_v46  ;;  %v1915_v7 = vadd.f32 %v3928_v2, %v1914_v10  ;;  %v2257_v46 = vunpack.c.l.b16 %v2205_v53 }
 0x298   :  { %v1976_v58 = vadd.f32 %v3923_v13, %v1887_v35  ;;  %v2004_v28 = vadd.f32 %v2003_v12, %v1915_v7  ;;  %v2128_v12 = vmax.f32 %v2126_v1, %v2127_v22  ;;  %v2276_v38 = vsel %vm2275_vm10, %v2257_v46, %v2274_v11 }
 0x29a   :  { %v2036_v26 = vmax.f32 %v1976_v58, 0.0  ;;  %v2047_v39 = vmax.f32 %v2004_v28, 0.0 }
 0x29c   :  { %v2070_v0 = vmul.f32 %v3954_v62, %v2036_v26  ;;  %v2081_v29 = vmul.f32 %v3952_v34, %v2047_v39 }
 0x29d   :  { %v1889_v19 = vpop.f32.mrf.mxu1  ;;  %v1916_v57 = vpop.f32.mrf.mxu3 }
 0x29e   :  { %v2131_v37 = vmax.f32 %v2069_v33, %v2070_v0  ;;  %v1917_v42 = vadd.f32 %v3928_v2, %v1916_v57  ;;  %v1890_v13 = vadd.f32 %v3928_v2, %v1889_v19  ;;  %v2008_v0 = vpop.f32.mrf.mxu2 }
 0x2a0   :  { %v2006_v25 = vadd.f32 %v2005_v8, %v1917_v42  ;;  %v1979_v16 = vadd.f32 %v3942_v21, %v1890_v13  ;;  %v2132_v10 = vrot.slane %v2131_v37, 4 }
 0x2a2   :  { %v2048_v47 = vmax.f32 %v2006_v25, 0.0  ;;  %v2037_v9 = vmax.f32 %v1979_v16, 0.0  ;;  %v2133_v51 = vmax.f32 %v2131_v37, %v2132_v10 }
 0x2a4   :  { %v2082_v31 = vmul.f32 %v3954_v62, %v2048_v47  ;;  %v2071_v63 = vmul.f32 %v3952_v34, %v2037_v9  ;;  %v2134_v7 = vrot.slane %v2133_v51, 2 }
 0x2a5   :  { %v1891_v41 = vpop.f32.mrf.mxu1 }
 0x2a6   :  { %v1892_v30 = vadd.f32 %v3928_v2, %v1891_v41  ;;  %v4055_v59 = vmax.f32 %v2081_v29, %v2082_v31  ;;  %v1919_v49 = vpop.f32.mrf.mxu3  ;;  %v2135_v5 = vmax.f32 %v2133_v51, %v2134_v7  ;;  %v2010_v43 = vpop.f32.mrf.mxu2 }
 0x2a8   :  { %v1981_v20 = vadd.f32 %v3962_v4, %v1892_v30  ;;  %v2129_v4 = vrot.slane %v2128_v12, 1  ;;  %v2136_v28 = vrot.slane %v2135_v5, 1  ;;  %v1920_v30 = vadd.f32 %v3928_v2, %v1919_v49 }
 0x2aa   :  { %v2038_v21 = vmax.f32 %v1981_v20, 0.0  ;;  %v2130_v48 = vmax.f32 %v2128_v12, %v2129_v4  ;;  %v2137_v23 = vmax.f32 %v2135_v5, %v2136_v28  ;;  %v2009_v1 = vadd.f32 %v2008_v0, %v1920_v30  ;;  %v2553_v28 = vld [vmem:[#allocation7 + $0x38] sm:$0xff] }
 0x2ab   :  { %2340 = vmatpush.bf16.msrb.mxu3 %v2553_v28 }
 0x2ac   :  { %v2072_v44 = vmul.f32 %v3954_v62, %v2038_v21  ;;  %v2206_v58 = vpack.c.bf16 %v2130_v48, %v2130_v48  ;;  %v2207_v16 = vpack.c.bf16 %v2137_v23, %v2137_v23  ;;  %v2049_v12 = vmax.f32 %v2009_v1, 0.0  ;;  %v2552_v1 = vld [vmem:[#allocation7 + $0x30] sm:$0xff] }
 0x2ad   :  { %v1894_v60 = vpop.f32.mrf.mxu1 }
 0x2ae   :  { %v2138_v45 = vmax.f32 %v2071_v63, %v2072_v44  ;;  %v1921_v52 = vpop.f32.mrf.mxu3  ;;  %v2258_v54 = vunpack.c.l.b16 %v2206_v58  ;;  %v1895_v39 = vadd.f32 %v3928_v2, %v1894_v60  ;;  %v2259_v21 = vunpack.c.l.b16 %v2207_v16 }
 0x2af   :  { %v1922_v47 = vadd.f32 %v3928_v2, %v1921_v52  ;;  %2341 = vmatpush.bf16.msrb.mxu3 %v2552_v1 }
 0x2b0   :  { %v2278_v57 = vsel %vm2277_vm11, %v2258_v54, %v2276_v38  ;;  %v2139_v42 = vrot.slane %v2138_v45, 4  ;;  %v1984_v3 = vadd.f32 %v3972_v15, %v1895_v39 }
 0x2b2   :  { %v2140_v40 = vmax.f32 %v2138_v45, %v2139_v42 }
 0x2b4   :  { %v2141_v20 = vrot.slane %v2140_v40, 2 }
 0x2b5   :  { %v1896_v35 = vpop.f32.mrf.mxu1 }
 0x2b6   :  { %v1924_v36 = vpop.f32.mrf.mxu3  ;;  %v1897_v37 = vadd.f32 %v3928_v2, %v1896_v35  ;;  %v2142_v45 = vmax.f32 %v2140_v40, %v2141_v20 }
 0x2b7   :  { %v1925_v48 = vadd.f32 %v3928_v2, %v1924_v36 }
 0x2b8   :  { %v1986_v24 = vadd.f32 %v3984_v56, %v1897_v37  ;;  %v2143_v51 = vrot.slane %v2142_v45, 1 }
 0x2ba   :  { %v2040_v11 = vmax.f32 %v1986_v24, 0.0  ;;  %v2144_v42 = vmax.f32 %v2142_v45, %v2143_v51  ;;  %v2551_v45 = vld [vmem:[#allocation7 + $0x28] sm:$0xff] }
 0x2bb   :  { %2342 = vmatpush.bf16.msrb.mxu3 %v2551_v45 }
 0x2bc   :  { %v2074_v53 = vmul.f32 %v3954_v62, %v2040_v11  ;;  %v2208_v30 = vpack.c.bf16 %v2144_v42, %v2144_v42 }
 0x2bd   :  { %v1899_v18 = vpop.f32.mrf.mxu1 }
 0x2be   :  { %v4063_v26 = vpop.f32.mrf.mxu3  ;;  %v1900_v8 = vadd.f32 %v3928_v2, %v1899_v18  ;;  %v2260_v11 = vunpack.c.l.b16 %v2208_v30 }
 0x2c0   :  { %v1989_v29 = vadd.f32 %v4000_v27, %v1900_v8  ;;  %v2039_v27 = vmax.f32 %v1984_v3, 0.0 }
 0x2c2   :  { %v2041_v32 = vmax.f32 %v1989_v29, 0.0  ;;  %v2073_v35 = vmul.f32 %v3952_v34, %v2039_v27 }
 0x2c4   :  { %v2075_v15 = vmul.f32 %v3952_v34, %v2041_v32  ;;  %v2145_v18 = vmax.f32 %v2073_v35, %v2074_v53 }
 0x2c5   :  { %v1901_v33 = vpop.f32.mrf.mxu1 }
 0x2c6   :  { %v1902_v55 = vadd.f32 %v3928_v2, %v1901_v33  ;;  %v2146_v37 = vrot.slane %v2145_v18, 4 }
 0x2c8   :  { %v4065_v19 = vpop.f32.mrf.mxu3  ;;  %v1991_v25 = vadd.f32 %v4012_v6, %v1902_v55  ;;  %v2011_v6 = vadd.f32 %v2010_v43, %v1922_v47  ;;  %v1927_v55 = vadd.f32 %v3928_v2, %v4063_v26  ;;  %v2147_v29 = vmax.f32 %v2145_v18, %v2146_v37 }
 0x2ca   :  { %v2042_v9 = vmax.f32 %v1991_v25, 0.0  ;;  %v2050_v49 = vmax.f32 %v2011_v6, 0.0  ;;  %v2174_v25 = vrot.slane %v4055_v59, 4 }
 0x2cc   :  { %v2076_v44 = vmul.f32 %v3954_v62, %v2042_v9  ;;  %v2084_v38 = vmul.f32 %v3954_v62, %v2050_v49  ;;  %v2175_v9 = vmax.f32 %v4055_v59, %v2174_v25 }
 0x2cd   :  { %v1904_v13 = vpop.f32.mrf.mxu1 }
 0x2ce   :  { %v1905_v31 = vadd.f32 %v3928_v2, %v1904_v13  ;;  %v2152_v4 = vmax.f32 %v2075_v15, %v2076_v44  ;;  %v2176_v15 = vrot.slane %v2175_v9, 2 }
 0x2d0   :  { %v4077_v41 = vpop.f32.mrf.mxu3  ;;  %v1994_v56 = vadd.f32 %v4022_v14, %v1905_v31  ;;  %v2280_v14 = vsel %vm2279_vm12, %v2259_v21, %v2278_v57  ;;  %v2153_v33 = vrot.slane %v2152_v4, 4  ;;  %v2177_v51 = vmax.f32 %v2175_v9, %v2176_v15 }
 0x2d1   :  { %v1932_v18 = vadd.f32 %v3928_v2, %v4077_v41 }
 0x2d2   :  { %v2043_v22 = vmax.f32 %v1994_v56, 0.0  ;;  %v2154_v40 = vmax.f32 %v2152_v4, %v2153_v33  ;;  %v2178_v42 = vrot.slane %v2177_v51, 1 }
 0x2d4   :  { %v2077_v58 = vmul.f32 %v3952_v34, %v2043_v22  ;;  %v2155_v20 = vrot.slane %v2154_v40, 2  ;;  %v1930_v22 = vadd.f32 %v3928_v2, %v4065_v19 }
 0x2d5   :  { %v1906_v63 = vpop.f32.mrf.mxu1 }
 0x2d6   :  { %v1907_v60 = vadd.f32 %v3928_v2, %v1906_v63  ;;  %v2148_v63 = vrot.slane %v2147_v29, 2  ;;  %v2156_v59 = vmax.f32 %v2154_v40, %v2155_v20 }
 0x2d8   :  { %v1996_v52 = vadd.f32 %v4028_v17, %v1907_v60  ;;  %v2013_v46 = vpop.f32.mrf.mxu3  ;;  %v2083_v17 = vmul.f32 %v3952_v34, %v2049_v12  ;;  %v4105_v60 = vsel %vm2281_vm13, %v2260_v11, %v2280_v14  ;;  %v2149_v12 = vmax.f32 %v2147_v29, %v2148_v63  ;;  %v2550_v14 = vld [vmem:[#allocation7 + $0x20] sm:$0xff] }
 0x2d9   :  { %v2014_v54 = vadd.f32 %v2013_v46, %v1925_v48  ;;  %2343 = vmatpush.bf16.msrb.mxu3 %v2550_v14  ;;  %v2546_v63 = vld [vmem:[#allocation7] sm:$0xff] }
 0x2da   :  { %v2044_v10 = vmax.f32 %v1996_v52, 0.0  ;;  %v2180_v57 = vmax.f32 %v2083_v17, %v2084_v38  ;;  %v2150_v19 = vrot.slane %v2149_v12, 1 }
 0x2db   :  { %v2051_v13 = vmax.f32 %v2014_v54, 0.0 }
 0x2dc   :  { %v2078_v7 = vmul.f32 %v3954_v62, %v2044_v10  ;;  %v2181_v47 = vrot.slane %v2180_v57, 4  ;;  %v2157_v10 = vrot.slane %v2156_v59, 1 }
 0x2dd   :  { %v1909_v5 = vpop.f32.mrf.mxu1  ;;  %v2085_v26 = vmul.f32 %v3952_v34, %v2051_v13 }
 0x2de   :  { %v2159_v0 = vmax.f32 %v2077_v58, %v2078_v7  ;;  %v1910_v23 = vadd.f32 %v3928_v2, %v1909_v5  ;;  %v2182_v21 = vmax.f32 %v2180_v57, %v2181_v47  ;;  %v2158_v28 = vmax.f32 %v2156_v59, %v2157_v10 }
 0x2e0   :  { %v2160_v36 = vrot.slane %v2159_v0, 4  ;;  %v2015_v8 = vpop.f32.mrf.mxu3  ;;  %v1999_v31 = vadd.f32 %v4033_v50, %v1910_v23  ;;  %v2183_v46 = vrot.slane %v2182_v21, 2  ;;  %v2210_v25 = vpack.c.bf16 %v2158_v28, %v2158_v28 }
 0x2e1   :  { %v2016_v39 = vadd.f32 %v2015_v8, %v1927_v55  ;;  %v2151_v8 = vmax.f32 %v2149_v12, %v2150_v19 }
 0x2e2   :  { %v2161_v24 = vmax.f32 %v2159_v0, %v2160_v36  ;;  %v2045_v27 = vmax.f32 %v1999_v31, 0.0  ;;  %v2184_v7 = vmax.f32 %v2182_v21, %v2183_v46  ;;  %v2549_v0 = vld [vmem:[#allocation7 + $0x18] sm:$0xff]  ;;  %v2262_v9 = vunpack.c.l.b16 %v2210_v25 }
 0x2e3   :  { %v2052_v16 = vmax.f32 %v2016_v39, 0.0  ;;  %2344 = vmatpush.bf16.msrb.mxu3 %v2549_v0  ;;  %v2548_v39 = vld [vmem:[#allocation7 + $0x10] sm:$0xff]  ;;  %v2209_v30 = vpack.c.bf16 %v2151_v8, %v2151_v8 }
 0x2e4   :  { %v2162_v32 = vrot.slane %v2161_v24, 2  ;;  %v2079_v35 = vmul.f32 %v3952_v34, %v2045_v27  ;;  %v2185_v23 = vrot.slane %v2184_v7, 1 }
 0x2e5   :  { %v2086_v43 = vmul.f32 %v3954_v62, %v2052_v16  ;;  %v1911_v3 = vpop.f32.mrf.mxu1 }
 0x2e6   :  { %v1912_v6 = vadd.f32 %v3928_v2, %v1911_v3  ;;  %v2163_v52 = vmax.f32 %v2161_v24, %v2162_v32  ;;  %v2179_v24 = vmax.f32 %v2177_v51, %v2178_v42  ;;  %v2186_v31 = vmax.f32 %v2184_v7, %v2185_v23  ;;  %v2547_v3 = vld [vmem:[#allocation7 + $0x8] sm:$0xff]  ;;  %v2607_v51 = vld [vmem:[%s4138_s6] ss:$0 sm:$0xff] }
 0x2e7   :  { %v2187_v56 = vmax.f32 %v2085_v26, %v2086_v43  ;;  %2345 = vmatpush.bf16.msrb.mxu3 %v2548_v39  ;;  %v2261_v32 = vunpack.c.l.b16 %v2209_v30 }
 0x2e8   :  { %v2001_v50 = vadd.f32 %v4040_v61, %v1912_v6  ;;  %v2018_v44 = vpop.f32.mrf.mxu3  ;;  %v2164_v58 = vrot.slane %v2163_v52, 1  ;;  %v2214_v21 = vpack.c.bf16 %v2186_v31, %v2186_v31 }
 0x2e9   :  { %v2188_v49 = vrot.slane %v2187_v56, 4  ;;  %v2019_v4 = vadd.f32 %v2018_v44, %v1930_v22  ;;  %v2283_v27 = vsel %vm2269_vm7, %v2262_v9, %v2261_v32 }
 0x2ea   :  { %v2046_v53 = vmax.f32 %v2001_v50, 0.0  ;;  %v2165_v37 = vmax.f32 %v2163_v52, %v2164_v58 }
 0x2eb   :  { %v2189_v38 = vmax.f32 %v2187_v56, %v2188_v49  ;;  %v2053_v5 = vmax.f32 %v2019_v4, 0.0  ;;  %2346 = vmatpush.bf16.msrb.mxu3 %v2547_v3 }
 0x2ec   :  { %v2080_v61 = vmul.f32 %v3954_v62, %v2046_v53  ;;  %v2211_v16 = vpack.c.bf16 %v2165_v37, %v2165_v37  ;;  %v2266_v53 = vunpack.c.l.b16 %v2214_v21 }
 0x2ed   :  { %v2190_v57 = vrot.slane %v2189_v38, 2  ;;  %v2087_v2 = vmul.f32 %v3952_v34, %v2053_v5  ;;  %v2213_v34 = vpack.c.bf16 %v2179_v24, %v2179_v24 }
 0x2ee   :  { %v2166_v48 = vmax.f32 %v2079_v35, %v2080_v61  ;;  %v2263_v11 = vunpack.c.l.b16 %v2211_v16 }
 0x2ef   :  { %v2191_v40 = vmax.f32 %v2189_v38, %v2190_v57  ;;  %v2265_v45 = vunpack.c.l.b16 %v2213_v34  ;;  %2347 = vmatpush.bf16.msrb.mxu3 %v2546_v63 }
 0x2f0   :  { %v2167_v17 = vrot.slane %v2166_v48, 4  ;;  %v2020_v54 = vpop.f32.mrf.mxu3  ;;  %v2284_v59 = vsel %vm2271_vm8, %v2263_v11, %v2283_v27 }
 0x2f1   :  { %v2021_v33 = vadd.f32 %v2020_v54, %v1932_v18  ;;  %v2192_v20 = vrot.slane %v2191_v40, 1 }
 0x2f2   :  { %v2168_v55 = vmax.f32 %v2166_v48, %v2167_v17 }
 0x2f3   :  { %v2054_v36 = vmax.f32 %v2021_v33, 0.0  ;;  %v2193_v50 = vmax.f32 %v2191_v40, %v2192_v20 }
 0x2f4   :  { %v2169_v13 = vrot.slane %v2168_v55, 2 }
 0x2f5   :  { %v2088_v41 = vmul.f32 %v3954_v62, %v2054_v36  ;;  %v2215_v46 = vpack.c.bf16 %v2193_v50, %v2193_v50 }
 0x2f6   :  { %v2170_v47 = vmax.f32 %v2168_v55, %v2169_v13 }
 0x2f7   :  { %v2194_v29 = vmax.f32 %v2087_v2, %v2088_v41  ;;  %v2267_v4 = vunpack.c.l.b16 %v2215_v46 }
 0x2f8   :  { %v2171_v26 = vrot.slane %v2170_v47, 1 }
 0x2f9   :  { %v2195_v43 = vrot.slane %v2194_v29, 4 }
 0x2fa   :  { %v2172_v6 = vmax.f32 %v2170_v47, %v2171_v26 }
 0x2fb   :  { %v2196_v62 = vmax.f32 %v2194_v29, %v2195_v43 }
 0x2fc   :  { %v2212_v56 = vpack.c.bf16 %v2172_v6, %v2172_v6 }
 0x2fd   :  { %v2197_v1 = vrot.slane %v2196_v62, 2 }
 0x2fe   :  { %v2264_v44 = vunpack.c.l.b16 %v2212_v56 }
 0x2ff   :  { %v2198_v49 = vmax.f32 %v2196_v62, %v2197_v1 }
 0x300   :  { %v2285_v15 = vsel %vm2273_vm9, %v2264_v44, %v2284_v59 }
 0x301   :  { %v2199_v22 = vrot.slane %v2198_v49, 1  ;;  %v2286_v52 = vsel %vm2275_vm10, %v2265_v45, %v2285_v15 }
 0x302   :  { %v2287_v12 = vsel %vm2277_vm11, %v2266_v53, %v2286_v52 }
 0x303   :  { %v2200_v35 = vmax.f32 %v2198_v49, %v2199_v22  ;;  %v2288_v10 = vsel %vm2279_vm12, %v2267_v4, %v2287_v12 }
 0x305   :  { %v2216_v61 = vpack.c.bf16 %v2200_v35, %v2200_v35 }
 0x307   :  { %v2268_v14 = vunpack.c.l.b16 %v2216_v61 }
 0x309   :  { %v2289_v38 = vsel %vm2281_vm13, %v2268_v14, %v2288_v10 }
 0x30a   :  { %v2290_v48 = vpack.c.b16 %v2289_v38, %v4105_v60 }
 0x30c   :  { %2348 = vmatmul.bf16.vlgmr.msrb.gmra.mxu3 %v2290_v48 }
 0x38f   :  { %v2349_v18 = vpop.f32.mrf.mxu3 }
 0x390   :  { %v2350_v58 = vadd.f32 %v2607_v51, %v2349_v18 }
 0x392   :  { %2354 = vst [vmem:[#allocation8] sm:$0xff] %v2350_v58 }
 0x397   :  { %v2351_v7 = vpop.f32.mrf.mxu3 }
 0x398   :  { %v2352_v19 = vadd.f32 %v2607_v51, %v2351_v7 }
 0x39a   :  { %2355 = vst [vmem:[#allocation8 + $0x8] sm:$0xff] %v2352_v19 }
 0x39b   :  { %2368 = dma.vmem_to_hbm [thread:$0]  %s2361_s1, 256, %s2363_s14, [#allocation4], %s2711_s9, %s2711_s9, %s2712_s10  }
 0x39c   :  { %2708 = dma.done.wait [#allocation4], 256  }
 0x39d   :  { %2709 = vsyncadd [#allocation4], 4294967040 }
 0x39e   :  { %2373 = vsyncpa [#allocation3], 1 }
 0x39f   :  { %2374 = vsyncpa [#allocation6], 1 }
 0x3a0   :  { %2375 = vsyncpa [#allocation4], 1 }

</bundles_post_ra>
